<compile_context>
chip_gen: v7x
topology: tpu7x:2x2x1
jax: 0.10.0
libtpu: 0.0.40
codegen_flags: <defaults>
</compile_context>

<pallas_src>
import functools
import math

import numpy as np
import jax
import jax.numpy as jnp
from jax.experimental import pallas as pl
from jax.experimental.pallas import tpu as pltpu


def _rmsnorm(v, w, eps):
    ms = jnp.mean(v * v, axis=-1, keepdims=True)
    return v * jax.lax.rsqrt(ms + eps) * w


def transformer_block_kernel(x_ref, wq_ref, wk_ref, wv_ref, wo_ref,
                             w1_ref, w2_ref, w3_ref,
                             attn_norm_ref, ffn_norm_ref,
                             cos_ref, sin_ref, rot_ref,
                             out_ref, *, n_heads, head_dim, eps):
    f32 = jnp.float32
    bf16 = jnp.bfloat16

    x = x_ref[0]                                   # (S, D) f32
    S, D = x.shape
    H, hd = n_heads, head_dim

    # ---- attention_norm (RMSNorm, f32) then cast once to bf16 for the MXU ----
    xn = _rmsnorm(x, attn_norm_ref[...], eps)
    xn_b = jnp.broadcast_to(xn.astype(bf16)[None], (H, S, D))   # (H, S, D) bf16

    # ---- QKV projections: one batched contraction per tensor (heads = batch dim) ----
    # weight layout (H, hd, D): q[h,s,f] = sum_d xn[s,d] * Wq[d, h*hd+f]
    q = jnp.einsum("hsd,hfd->hsf", xn_b, wq_ref[...], preferred_element_type=f32)
    k = jnp.einsum("hsd,hfd->hsf", xn_b, wk_ref[...], preferred_element_type=f32)
    v = jnp.einsum("hsd,hfd->hsf", xn_b, wv_ref[...], preferred_element_type=f32)

    # ---- rotary embedding on interleaved (re, im) pairs: rot(t) = t @ R (MXU, exact +/-1) ----
    cos = cos_ref[...]                             # (S, hd) f32, frequency duplicated per pair
    sin = sin_ref[...]
    rot = rot_ref[...]                             # (H, hd, hd) bf16 (+/-1 pair-swap matrix)

    def rope(t):
        t_rot = jnp.einsum("hsd,hde->hse", t.astype(bf16), rot,
                           preferred_element_type=f32)
        return t * cos + t_rot * sin               # broadcasts (S,hd) -> (H,S,hd)

    q = rope(q)
    k = rope(k)

    # ---- causal additive mask generated in-kernel (no HBM (S,S) input) ----
    row = jax.lax.broadcasted_iota(jnp.int32, (S, S), 0)
    col = jax.lax.broadcasted_iota(jnp.int32, (S, S), 1)
    bias = jnp.where(col <= row, 0.0, -1e9).astype(f32)         # (S, S)

    # ---- batched scaled-dot-product attention, softmax in f32 ----
    scale = 1.0 / math.sqrt(hd)
    s = jnp.einsum("hqd,hkd->hqk", q.astype(bf16), k.astype(bf16),
                   preferred_element_type=f32) * scale + bias    # (H, S, S)
    s = s - jnp.max(s, axis=-1, keepdims=True)
    p = jnp.exp(s)
    p = p * pl.reciprocal(jnp.sum(p, axis=-1, keepdims=True), approx=True)
    o = jnp.einsum("hqk,hkd->hqd", p.astype(bf16), v.astype(bf16),
                   preferred_element_type=f32)                   # (H, S, hd)

    # ---- output projection: per-head partial Wo products summed over heads (no concat) ----
    attn = jnp.sum(
        jnp.einsum("hsf,hfd->hsd", o.astype(bf16), wo_ref[...],
                   preferred_element_type=f32),
        axis=0)                                                  # (S, D) f32

    h_res = x + attn

    # ---- ffn_norm + SwiGLU feed-forward (bf16 MXU inputs, f32 elementwise) ----
    hn = _rmsnorm(h_res, ffn_norm_ref[...], eps).astype(bf16)
    g = jnp.dot(hn, w1_ref[...], preferred_element_type=f32)
    u = jnp.dot(hn, w3_ref[...], preferred_element_type=f32)
    ff_in = (g * jax.nn.sigmoid(g)) * u                          # silu(w1 x) * (w3 x), f32
    ff = jnp.dot(ff_in.astype(bf16), w2_ref[...], preferred_element_type=f32)

    out_ref[0] = h_res + ff


def transformer_block(x, params, cos_hd, sin_hd, *, n_heads, eps=1e-5):
    B, S, D = x.shape
    assert D % n_heads == 0
    hd = D // n_heads
    assert hd % 2 == 0
    bf16 = jnp.bfloat16

    # ---- host-side weight repack (free layout plumbing, done outside the kernel) ----
    # (in, out) -> (H, hd, D): wq3[h, f, d] = Wq[d, h*hd + f]
    wq3 = jnp.transpose(params["wq"]).reshape(n_heads, hd, D).astype(bf16)
    wk3 = jnp.transpose(params["wk"]).reshape(n_heads, hd, D).astype(bf16)
    wv3 = jnp.transpose(params["wv"]).reshape(n_heads, hd, D).astype(bf16)
    # wo: (D_in, D_out) -> (H, hd, D): wo3[h, f, d] = Wo[h*hd + f, d]
    wo3 = params["wo"].reshape(n_heads, hd, D).astype(bf16)
    w1 = params["w1"].astype(bf16)
    w2 = params["w2"].astype(bf16)
    w3 = params["w3"].astype(bf16)

    # RoPE pair-swap matrix: rot(t)[2i] = -t[2i+1], rot(t)[2i+1] = t[2i]  (exact in bf16)
    R = np.zeros((hd, hd), np.float32)
    R[np.arange(1, hd, 2), np.arange(0, hd, 2)] = -1.0
    R[np.arange(0, hd, 2), np.arange(1, hd, 2)] = 1.0
    rot3 = jnp.broadcast_to(jnp.asarray(R, bf16)[None], (n_heads, hd, hd))

    kernel = functools.partial(transformer_block_kernel,
                               n_heads=n_heads, head_dim=hd, eps=eps)

    operands = (x, wq3, wk3, wv3, wo3, w1, w2, w3,
                params["attn_norm"], params["ffn_norm"], cos_hd, sin_hd, rot3)

    def const_spec(a):
        # Full-array block, constant index map -> fetched once across the batch grid.
        return pl.BlockSpec(a.shape, lambda b, _n=a.ndim: (0,) * _n)

    in_specs = [pl.BlockSpec((1, S, D), lambda b: (b, 0, 0))] + \
               [const_spec(a) for a in operands[1:]]

    return pl.pallas_call(
        kernel,
        out_shape=jax.ShapeDtypeStruct((B, S, D), jnp.float32),
        grid=(B,),
        in_specs=in_specs,
        out_specs=pl.BlockSpec((1, S, D), lambda b: (b, 0, 0)),
        compiler_params=pltpu.CompilerParams(
            # batch elements are independent -> shard across v7x's 2 TensorCores
            dimension_semantics=("parallel",),
            # bf16 weights (double-buffered) + activations are well under this at test sizes;
            # recompute for real model dims (approx 2 * 2 * (4*D*D + 3*D*F) bytes + activations).
            vmem_limit_bytes=32 * 1024 * 1024,
        ),
    )(*operands)


# ---------------- pure-JAX f32 reference (mirrors the PyTorch forward) ----------------
def ref_transformer_block(x, params, cos_half, sin_half, mask, *, n_heads, eps=1e-5):
    B, S, D = x.shape
    hd = D // n_heads

    def rmsnorm(v, w):
        ms = jnp.mean(v * v, axis=-1, keepdims=True)
        return v * jax.lax.rsqrt(ms + eps) * w

    xn = rmsnorm(x, params["attn_norm"][0])
    q = (xn @ params["wq"]).reshape(B, S, n_heads, hd)
    k = (xn @ params["wk"]).reshape(B, S, n_heads, hd)
    v = (xn @ params["wv"]).reshape(B, S, n_heads, hd)

    def rope(t):
        tr = t.reshape(B, S, n_heads, hd // 2, 2)
        re, im = tr[..., 0], tr[..., 1]
        c = cos_half[None, :, None, :]
        s = sin_half[None, :, None, :]
        return jnp.stack([re * c - im * s, re * s + im * c], axis=-1).reshape(B, S, n_heads, hd)

    q, k = rope(q), rope(k)
    q = q.transpose(0, 2, 1, 3)
    k = k.transpose(0, 2, 1, 3)
    v = v.transpose(0, 2, 1, 3)
    scores = (q @ jnp.swapaxes(k, -1, -2)) / math.sqrt(hd) + mask[None, None]
    p = jax.nn.softmax(scores, axis=-1)
    o = (p @ v).transpose(0, 2, 1, 3).reshape(B, S, D)
    h = x + o @ params["wo"]
    hn = rmsnorm(h, params["ffn_norm"][0])
    g = hn @ params["w1"]
    u = hn @ params["w3"]
    return h + (jax.nn.silu(g) * u) @ params["w2"]


if __name__ == "__main__":
    # Small ModelArgs: dim=128, n_heads=4, multiple_of=256 -> ffn hidden = 512
    B, S, D, H = 2, 8, 128, 4
    hd = D // H
    multiple_of = 256
    hidden = int(2 * (4 * D) / 3)
    hidden = multiple_of * ((hidden + multiple_of - 1) // multiple_of)   # 512
    eps = 1e-5

    key = jax.random.PRNGKey(0)
    ks = jax.random.split(key, 9)
    scale = 0.02
    params = {
        "wq": scale * jax.random.normal(ks[0], (D, D), jnp.float32),
        "wk": scale * jax.random.normal(ks[1], (D, D), jnp.float32),
        "wv": scale * jax.random.normal(ks[2], (D, D), jnp.float32),
        "wo": scale * jax.random.normal(ks[3], (D, D), jnp.float32),
        "w1": scale * jax.random.normal(ks[4], (D, hidden), jnp.float32),
        "w2": scale * jax.random.normal(ks[5], (hidden, D), jnp.float32),
        "w3": scale * jax.random.normal(ks[6], (D, hidden), jnp.float32),
        "attn_norm": jnp.ones((1, D), jnp.float32),   # RMSNorm weight init = ones
        "ffn_norm": jnp.ones((1, D), jnp.float32),
    }

    x = jax.random.normal(ks[7], (B, S, D), jnp.float32)

    # freqs_cis (start_pos = 0), theta = 10000
    inv_freq = 1.0 / (10000.0 ** (jnp.arange(0, hd, 2, dtype=jnp.float32) / hd))  # (hd/2,)
    t = jnp.arange(S, dtype=jnp.float32)
    ang = jnp.outer(t, inv_freq)                     # (S, hd/2)
    cos_half, sin_half = jnp.cos(ang), jnp.sin(ang)
    cos_hd = jnp.repeat(cos_half, 2, axis=-1)        # (S, hd) duplicated over (re, im) lanes
    sin_hd = jnp.repeat(sin_half, 2, axis=-1)

    # causal additive mask (reference only; the kernel builds it in-VMEM)
    row = jnp.arange(S)[:, None]
    col = jnp.arange(S)[None, :]
    mask = jnp.where(col <= row, 0.0, -1e9).astype(jnp.float32)

    out = transformer_block(x, params, cos_hd, sin_hd, n_heads=H, eps=eps)
    out = jax.block_until_ready(out)

    ref = ref_transformer_block(x, params, cos_half, sin_half, mask, n_heads=H, eps=eps)
    assert out.shape == (B, S, D)
    err = jnp.max(jnp.abs(out - ref))
    # tolerance covers bf16 MXU inputs / approx reciprocal vs. the f32 reference
    assert jnp.allclose(out, ref, atol=2e-2, rtol=2e-2), f"max err {err}"

    print("KERNEL_OK")
</pallas_src>

<mosaic_0001>
module attributes {stable_mosaic.version = 11 : i64} {
  func.func @transformer_block_kernel(%arg0: i32, %arg1: memref<1x8x128xf32, #tpu.memory_space<vmem>>, %arg2: memref<4x32x128xbf16, #tpu.memory_space<vmem>>, %arg3: memref<4x32x128xbf16, #tpu.memory_space<vmem>>, %arg4: memref<4x32x128xbf16, #tpu.memory_space<vmem>>, %arg5: memref<4x32x128xbf16, #tpu.memory_space<vmem>>, %arg6: memref<128x512xbf16, #tpu.memory_space<vmem>>, %arg7: memref<512x128xbf16, #tpu.memory_space<vmem>>, %arg8: memref<128x512xbf16, #tpu.memory_space<vmem>>, %arg9: memref<1x128xf32, #tpu.memory_space<vmem>>, %arg10: memref<1x128xf32, #tpu.memory_space<vmem>>, %arg11: memref<8x32xf32, #tpu.memory_space<vmem>>, %arg12: memref<8x32xf32, #tpu.memory_space<vmem>>, %arg13: memref<4x32x32xbf16, #tpu.memory_space<vmem>>, %arg14: memref<1x8x128xf32, #tpu.memory_space<vmem>>) attributes {dimension_semantics = [#tpu.dimension_semantics<parallel>], iteration_bounds = array<i64: 2>, scalar_prefetch = 0 : i64, scratch_operands = 0 : i64, tpu.core_type = #tpu.core_type<tc>, window_params = [{transform_indices = @transform_0, window_bounds = array<i64: 1, 8, 128>}, {pipeline_mode = #tpu.pipeline_mode<synchronous>, transform_indices = @transform_1, window_bounds = array<i64: 4, 32, 128>}, {pipeline_mode = #tpu.pipeline_mode<synchronous>, transform_indices = @transform_2, window_bounds = array<i64: 4, 32, 128>}, {pipeline_mode = #tpu.pipeline_mode<synchronous>, transform_indices = @transform_3, window_bounds = array<i64: 4, 32, 128>}, {pipeline_mode = #tpu.pipeline_mode<synchronous>, transform_indices = @transform_4, window_bounds = array<i64: 4, 32, 128>}, {pipeline_mode = #tpu.pipeline_mode<synchronous>, transform_indices = @transform_5, window_bounds = array<i64: 128, 512>}, {pipeline_mode = #tpu.pipeline_mode<synchronous>, transform_indices = @transform_6, window_bounds = array<i64: 512, 128>}, {pipeline_mode = #tpu.pipeline_mode<synchronous>, transform_indices = @transform_7, window_bounds = array<i64: 128, 512>}, {pipeline_mode = #tpu.pipeline_mode<synchronous>, transform_indices = @transform_8, window_bounds = array<i64: 1, 128>}, {pipeline_mode = #tpu.pipeline_mode<synchronous>, transform_indices = @transform_9, window_bounds = array<i64: 1, 128>}, {pipeline_mode = #tpu.pipeline_mode<synchronous>, transform_indices = @transform_10, window_bounds = array<i64: 8, 32>}, {pipeline_mode = #tpu.pipeline_mode<synchronous>, transform_indices = @transform_11, window_bounds = array<i64: 8, 32>}, {pipeline_mode = #tpu.pipeline_mode<synchronous>, transform_indices = @transform_12, window_bounds = array<i64: 4, 32, 32>}, {transform_indices = @transform_13, window_bounds = array<i64: 1, 8, 128>}]} {
    %c0 = arith.constant 0 : index
    %c0_0 = arith.constant 0 : index
    %c0_1 = arith.constant 0 : index
    %0 = vector.load %arg1[%c0, %c0_0, %c0_1] : memref<1x8x128xf32, #tpu.memory_space<vmem>>, vector<1x8x128xf32>
    %1 = vector.shape_cast %0 : vector<1x8x128xf32> to vector<8x128xf32>
    %c0_2 = arith.constant 0 : index
    %c0_3 = arith.constant 0 : index
    %2 = vector.load %arg9[%c0_2, %c0_3] : memref<1x128xf32, #tpu.memory_space<vmem>>, vector<1x128xf32>
    %3 = arith.mulf %1, %1 : vector<8x128xf32>
    %cst = arith.constant dense<0.000000e+00> : vector<8xf32>
    %4 = vector.multi_reduction <add>, %3, %cst [1] : vector<8x128xf32> to vector<8xf32>
    %5 = vector.shape_cast %4 : vector<8xf32> to vector<8x1xf32>
    %cst_4 = arith.constant 1.280000e+02 : f32
    %6 = vector.broadcast %cst_4 : f32 to vector<8x1xf32>
    %7 = arith.divf %5, %6 : vector<8x1xf32>
    %cst_5 = arith.constant 9.99999974E-6 : f32
    %8 = vector.broadcast %cst_5 : f32 to vector<8x1xf32>
    %9 = arith.addf %7, %8 : vector<8x1xf32>
    %10 = math.rsqrt %9 : vector<8x1xf32>
    %11 = vector.broadcast %10 : vector<8x1xf32> to vector<8x128xf32>
    %12 = arith.mulf %1, %11 : vector<8x128xf32>
    %13 = vector.broadcast %2 : vector<1x128xf32> to vector<8x128xf32>
    %14 = arith.mulf %12, %13 : vector<8x128xf32>
    %15 = arith.truncf %14 : vector<8x128xf32> to vector<8x128xbf16>
    %16 = vector.shape_cast %15 : vector<8x128xbf16> to vector<1x8x128xbf16>
    %17 = vector.shape_cast %16 : vector<1x8x128xbf16> to vector<1x8x128xbf16>
    %18 = vector.broadcast %17 : vector<1x8x128xbf16> to vector<4x8x128xbf16>
    %c0_6 = arith.constant 0 : index
    %c0_7 = arith.constant 0 : index
    %c0_8 = arith.constant 0 : index
    %19 = vector.load %arg2[%c0_6, %c0_7, %c0_8] : memref<4x32x128xbf16, #tpu.memory_space<vmem>>, vector<4x32x128xbf16>
    "tpu.trace_start"() <{level = 10 : i32, message = "hsd,hfd->hsf"}> : () -> ()
    %cst_9 = arith.constant dense<0.000000e+00> : vector<4x8x32xf32>
    %20 = tpu.matmul %18, %19, %cst_9 {dimension_numbers = #tpu.dot_dimension_numbers<[2], [2], [1], [1], [0, 0, 0, 1, 1, 1], [0], [0]>} : vector<4x8x128xbf16>, vector<4x32x128xbf16>, vector<4x8x32xf32> -> vector<4x8x32xf32>
    "tpu.trace_stop"() : () -> ()
    %c0_10 = arith.constant 0 : index
    %c0_11 = arith.constant 0 : index
    %c0_12 = arith.constant 0 : index
    %21 = vector.load %arg3[%c0_10, %c0_11, %c0_12] : memref<4x32x128xbf16, #tpu.memory_space<vmem>>, vector<4x32x128xbf16>
    "tpu.trace_start"() <{level = 10 : i32, message = "hsd,hfd->hsf"}> : () -> ()
    %cst_13 = arith.constant dense<0.000000e+00> : vector<4x8x32xf32>
    %22 = tpu.matmul %18, %21, %cst_13 {dimension_numbers = #tpu.dot_dimension_numbers<[2], [2], [1], [1], [0, 0, 0, 1, 1, 1], [0], [0]>} : vector<4x8x128xbf16>, vector<4x32x128xbf16>, vector<4x8x32xf32> -> vector<4x8x32xf32>
    "tpu.trace_stop"() : () -> ()
    %c0_14 = arith.constant 0 : index
    %c0_15 = arith.constant 0 : index
    %c0_16 = arith.constant 0 : index
    %23 = vector.load %arg4[%c0_14, %c0_15, %c0_16] : memref<4x32x128xbf16, #tpu.memory_space<vmem>>, vector<4x32x128xbf16>
    "tpu.trace_start"() <{level = 10 : i32, message = "hsd,hfd->hsf"}> : () -> ()
    %cst_17 = arith.constant dense<0.000000e+00> : vector<4x8x32xf32>
    %24 = tpu.matmul %18, %23, %cst_17 {dimension_numbers = #tpu.dot_dimension_numbers<[2], [2], [1], [1], [0, 0, 0, 1, 1, 1], [0], [0]>} : vector<4x8x128xbf16>, vector<4x32x128xbf16>, vector<4x8x32xf32> -> vector<4x8x32xf32>
    "tpu.trace_stop"() : () -> ()
    %c0_18 = arith.constant 0 : index
    %c0_19 = arith.constant 0 : index
    %25 = vector.load %arg11[%c0_18, %c0_19] : memref<8x32xf32, #tpu.memory_space<vmem>>, vector<8x32xf32>
    %c0_20 = arith.constant 0 : index
    %c0_21 = arith.constant 0 : index
    %26 = vector.load %arg12[%c0_20, %c0_21] : memref<8x32xf32, #tpu.memory_space<vmem>>, vector<8x32xf32>
    %c0_22 = arith.constant 0 : index
    %c0_23 = arith.constant 0 : index
    %c0_24 = arith.constant 0 : index
    %27 = vector.load %arg13[%c0_22, %c0_23, %c0_24] : memref<4x32x32xbf16, #tpu.memory_space<vmem>>, vector<4x32x32xbf16>
    %28 = arith.truncf %20 : vector<4x8x32xf32> to vector<4x8x32xbf16>
    "tpu.trace_start"() <{level = 10 : i32, message = "hsd,hde->hse"}> : () -> ()
    %cst_25 = arith.constant dense<0.000000e+00> : vector<4x8x32xf32>
    %29 = tpu.matmul %28, %27, %cst_25 {dimension_numbers = #tpu.dot_dimension_numbers<[2], [1], [1], [2], [0, 0, 0, 1, 1, 2], [0], [0]>} : vector<4x8x32xbf16>, vector<4x32x32xbf16>, vector<4x8x32xf32> -> vector<4x8x32xf32>
    "tpu.trace_stop"() : () -> ()
    %30 = vector.shape_cast %25 : vector<8x32xf32> to vector<1x8x32xf32>
    %31 = vector.broadcast %30 : vector<1x8x32xf32> to vector<4x8x32xf32>
    %32 = arith.mulf %20, %31 : vector<4x8x32xf32>
    %33 = vector.shape_cast %26 : vector<8x32xf32> to vector<1x8x32xf32>
    %34 = vector.broadcast %33 : vector<1x8x32xf32> to vector<4x8x32xf32>
    %35 = arith.mulf %29, %34 : vector<4x8x32xf32>
    %36 = arith.addf %32, %35 : vector<4x8x32xf32>
    %37 = arith.truncf %22 : vector<4x8x32xf32> to vector<4x8x32xbf16>
    "tpu.trace_start"() <{level = 10 : i32, message = "hsd,hde->hse"}> : () -> ()
    %cst_26 = arith.constant dense<0.000000e+00> : vector<4x8x32xf32>
    %38 = tpu.matmul %37, %27, %cst_26 {dimension_numbers = #tpu.dot_dimension_numbers<[2], [1], [1], [2], [0, 0, 0, 1, 1, 2], [0], [0]>} : vector<4x8x32xbf16>, vector<4x32x32xbf16>, vector<4x8x32xf32> -> vector<4x8x32xf32>
    "tpu.trace_stop"() : () -> ()
    %39 = vector.shape_cast %25 : vector<8x32xf32> to vector<1x8x32xf32>
    %40 = vector.broadcast %39 : vector<1x8x32xf32> to vector<4x8x32xf32>
    %41 = arith.mulf %22, %40 : vector<4x8x32xf32>
    %42 = vector.shape_cast %26 : vector<8x32xf32> to vector<1x8x32xf32>
    %43 = vector.broadcast %42 : vector<1x8x32xf32> to vector<4x8x32xf32>
    %44 = arith.mulf %38, %43 : vector<4x8x32xf32>
    %45 = arith.addf %41, %44 : vector<4x8x32xf32>
    %46 = tpu.iota {dimensions = array<i32: 0>} : vector<8x8xi32>
    %47 = tpu.iota {dimensions = array<i32: 1>} : vector<8x8xi32>
    %48 = arith.cmpi sle, %47, %46 : vector<8x8xi32>
    %cst_27 = arith.constant 0.000000e+00 : f32
    %cst_28 = arith.constant -1.000000e+09 : f32
    %49 = vector.broadcast %cst_27 : f32 to vector<8x8xf32>
    %50 = vector.broadcast %cst_28 : f32 to vector<8x8xf32>
    %51 = arith.select %48, %49, %50 : vector<8x8xi1>, vector<8x8xf32>
    %52 = arith.truncf %36 : vector<4x8x32xf32> to vector<4x8x32xbf16>
    %53 = arith.truncf %45 : vector<4x8x32xf32> to vector<4x8x32xbf16>
    "tpu.trace_start"() <{level = 10 : i32, message = "hqd,hkd->hqk"}> : () -> ()
    %cst_29 = arith.constant dense<0.000000e+00> : vector<4x8x8xf32>
    %54 = tpu.matmul %52, %53, %cst_29 {dimension_numbers = #tpu.dot_dimension_numbers<[2], [2], [1], [1], [0, 0, 0, 1, 1, 1], [0], [0]>} : vector<4x8x32xbf16>, vector<4x8x32xbf16>, vector<4x8x8xf32> -> vector<4x8x8xf32>
    "tpu.trace_stop"() : () -> ()
    %cst_30 = arith.constant 0.176776692 : f32
    %55 = vector.broadcast %cst_30 : f32 to vector<4x8x8xf32>
    %56 = arith.mulf %54, %55 : vector<4x8x8xf32>
    %57 = vector.shape_cast %51 : vector<8x8xf32> to vector<1x8x8xf32>
    %58 = vector.broadcast %57 : vector<1x8x8xf32> to vector<4x8x8xf32>
    %59 = arith.addf %56, %58 : vector<4x8x8xf32>
    %cst_31 = arith.constant dense<0xFF800000> : vector<4x8xf32>
    %60 = vector.multi_reduction <maximumf>, %59, %cst_31 [2] : vector<4x8x8xf32> to vector<4x8xf32>
    %61 = vector.shape_cast %60 : vector<4x8xf32> to vector<4x8x1xf32>
    %62 = vector.broadcast %61 : vector<4x8x1xf32> to vector<4x8x8xf32>
    %63 = arith.subf %59, %62 : vector<4x8x8xf32>
    %64 = math.exp %63 : vector<4x8x8xf32>
    %cst_32 = arith.constant dense<0.000000e+00> : vector<4x8xf32>
    %65 = vector.multi_reduction <add>, %64, %cst_32 [2] : vector<4x8x8xf32> to vector<4x8xf32>
    %66 = vector.shape_cast %65 : vector<4x8xf32> to vector<4x8x1xf32>
    %67 = tpu.reciprocal %66 {approx = true} : vector<4x8x1xf32> -> vector<4x8x1xf32>
    %68 = vector.broadcast %67 : vector<4x8x1xf32> to vector<4x8x8xf32>
    %69 = arith.mulf %64, %68 : vector<4x8x8xf32>
    %70 = arith.truncf %69 : vector<4x8x8xf32> to vector<4x8x8xbf16>
    %71 = arith.truncf %24 : vector<4x8x32xf32> to vector<4x8x32xbf16>
    "tpu.trace_start"() <{level = 10 : i32, message = "hqk,hkd->hqd"}> : () -> ()
    %cst_33 = arith.constant dense<0.000000e+00> : vector<4x8x32xf32>
    %72 = tpu.matmul %70, %71, %cst_33 {dimension_numbers = #tpu.dot_dimension_numbers<[2], [1], [1], [2], [0, 0, 0, 1, 1, 2], [0], [0]>} : vector<4x8x8xbf16>, vector<4x8x32xbf16>, vector<4x8x32xf32> -> vector<4x8x32xf32>
    "tpu.trace_stop"() : () -> ()
    %73 = arith.truncf %72 : vector<4x8x32xf32> to vector<4x8x32xbf16>
    %c0_34 = arith.constant 0 : index
    %c0_35 = arith.constant 0 : index
    %c0_36 = arith.constant 0 : index
    %74 = vector.load %arg5[%c0_34, %c0_35, %c0_36] : memref<4x32x128xbf16, #tpu.memory_space<vmem>>, vector<4x32x128xbf16>
    "tpu.trace_start"() <{level = 10 : i32, message = "hsf,hfd->hsd"}> : () -> ()
    %cst_37 = arith.constant dense<0.000000e+00> : vector<4x8x128xf32>
    %75 = tpu.matmul %73, %74, %cst_37 {dimension_numbers = #tpu.dot_dimension_numbers<[2], [1], [1], [2], [0, 0, 0, 1, 1, 2], [0], [0]>} : vector<4x8x32xbf16>, vector<4x32x128xbf16>, vector<4x8x128xf32> -> vector<4x8x128xf32>
    "tpu.trace_stop"() : () -> ()
    %cst_38 = arith.constant dense<0.000000e+00> : vector<8x128xf32>
    %76 = vector.multi_reduction <add>, %75, %cst_38 [0] : vector<4x8x128xf32> to vector<8x128xf32>
    %77 = arith.addf %1, %76 : vector<8x128xf32>
    %c0_39 = arith.constant 0 : index
    %c0_40 = arith.constant 0 : index
    %78 = vector.load %arg10[%c0_39, %c0_40] : memref<1x128xf32, #tpu.memory_space<vmem>>, vector<1x128xf32>
    %79 = arith.mulf %77, %77 : vector<8x128xf32>
    %cst_41 = arith.constant dense<0.000000e+00> : vector<8xf32>
    %80 = vector.multi_reduction <add>, %79, %cst_41 [1] : vector<8x128xf32> to vector<8xf32>
    %81 = vector.shape_cast %80 : vector<8xf32> to vector<8x1xf32>
    %cst_42 = arith.constant 1.280000e+02 : f32
    %82 = vector.broadcast %cst_42 : f32 to vector<8x1xf32>
    %83 = arith.divf %81, %82 : vector<8x1xf32>
    %cst_43 = arith.constant 9.99999974E-6 : f32
    %84 = vector.broadcast %cst_43 : f32 to vector<8x1xf32>
    %85 = arith.addf %83, %84 : vector<8x1xf32>
    %86 = math.rsqrt %85 : vector<8x1xf32>
    %87 = vector.broadcast %86 : vector<8x1xf32> to vector<8x128xf32>
    %88 = arith.mulf %77, %87 : vector<8x128xf32>
    %89 = vector.broadcast %78 : vector<1x128xf32> to vector<8x128xf32>
    %90 = arith.mulf %88, %89 : vector<8x128xf32>
    %91 = arith.truncf %90 : vector<8x128xf32> to vector<8x128xbf16>
    %c0_44 = arith.constant 0 : index
    %c0_45 = arith.constant 0 : index
    %92 = vector.load %arg6[%c0_44, %c0_45] : memref<128x512xbf16, #tpu.memory_space<vmem>>, vector<128x512xbf16>
    %cst_46 = arith.constant dense<0.000000e+00> : vector<8x512xf32>
    %93 = tpu.matmul %91, %92, %cst_46 {dimension_numbers = #tpu.dot_dimension_numbers<[1], [0], [0], [1], [0, 0, 1, 1], [], []>} : vector<8x128xbf16>, vector<128x512xbf16>, vector<8x512xf32> -> vector<8x512xf32>
    %c0_47 = arith.constant 0 : index
    %c0_48 = arith.constant 0 : index
    %94 = vector.load %arg8[%c0_47, %c0_48] : memref<128x512xbf16, #tpu.memory_space<vmem>>, vector<128x512xbf16>
    %cst_49 = arith.constant dense<0.000000e+00> : vector<8x512xf32>
    %95 = tpu.matmul %91, %94, %cst_49 {dimension_numbers = #tpu.dot_dimension_numbers<[1], [0], [0], [1], [0, 0, 1, 1], [], []>} : vector<8x128xbf16>, vector<128x512xbf16>, vector<8x512xf32> -> vector<8x512xf32>
    %96 = arith.negf %93 : vector<8x512xf32>
    %97 = math.exp %96 : vector<8x512xf32>
    %cst_50 = arith.constant 1.000000e+00 : f32
    %98 = vector.broadcast %cst_50 : f32 to vector<8x512xf32>
    %99 = arith.addf %98, %97 : vector<8x512xf32>
    %100 = arith.divf %98, %99 : vector<8x512xf32>
    %101 = arith.mulf %93, %100 : vector<8x512xf32>
    %102 = arith.mulf %101, %95 : vector<8x512xf32>
    %103 = arith.truncf %102 : vector<8x512xf32> to vector<8x512xbf16>
    %c0_51 = arith.constant 0 : index
    %c0_52 = arith.constant 0 : index
    %104 = vector.load %arg7[%c0_51, %c0_52] : memref<512x128xbf16, #tpu.memory_space<vmem>>, vector<512x128xbf16>
    %cst_53 = arith.constant dense<0.000000e+00> : vector<8x128xf32>
    %105 = tpu.matmul %103, %104, %cst_53 {dimension_numbers = #tpu.dot_dimension_numbers<[1], [0], [0], [1], [0, 0, 1, 1], [], []>} : vector<8x512xbf16>, vector<512x128xbf16>, vector<8x128xf32> -> vector<8x128xf32>
    %106 = arith.addf %77, %105 : vector<8x128xf32>
    %c0_54 = arith.constant 0 : index
    %c0_55 = arith.constant 0 : index
    %c0_56 = arith.constant 0 : index
    %107 = vector.load %arg14[%c0_54, %c0_55, %c0_56] : memref<1x8x128xf32, #tpu.memory_space<vmem>>, vector<1x8x128xf32>
    %108 = vector.shape_cast %107 : vector<1x8x128xf32> to vector<8x128xf32>
    %109 = vector.shape_cast %106 : vector<8x128xf32> to vector<1x8x128xf32>
    tpu.vector_store %arg14[%c0_54, %c0_55, %c0_56], %109 {strides = array<i32>} : memref<1x8x128xf32, #tpu.memory_space<vmem>>, vector<1x8x128xf32>,
    return
  }
  func.func @transform_0(%arg0: i32) -> (i32, i32, i32) {
    %c0_i32 = arith.constant 0 : i32
    %c0_i32_0 = arith.constant 0 : i32
    %c0_i32_1 = arith.constant 0 : i32
    return %arg0, %c0_i32, %c0_i32_0 : i32, i32, i32
  }
  func.func @transform_1(%arg0: i32) -> (i32, i32, i32) {
    %c0_i32 = arith.constant 0 : i32
    %c0_i32_0 = arith.constant 0 : i32
    %c0_i32_1 = arith.constant 0 : i32
    %c0_i32_2 = arith.constant 0 : i32
    return %c0_i32, %c0_i32_0, %c0_i32_1 : i32, i32, i32
  }
  func.func @transform_2(%arg0: i32) -> (i32, i32, i32) {
    %c0_i32 = arith.constant 0 : i32
    %c0_i32_0 = arith.constant 0 : i32
    %c0_i32_1 = arith.constant 0 : i32
    %c0_i32_2 = arith.constant 0 : i32
    return %c0_i32, %c0_i32_0, %c0_i32_1 : i32, i32, i32
  }
  func.func @transform_3(%arg0: i32) -> (i32, i32, i32) {
    %c0_i32 = arith.constant 0 : i32
    %c0_i32_0 = arith.constant 0 : i32
    %c0_i32_1 = arith.constant 0 : i32
    %c0_i32_2 = arith.constant 0 : i32
    return %c0_i32, %c0_i32_0, %c0_i32_1 : i32, i32, i32
  }
  func.func @transform_4(%arg0: i32) -> (i32, i32, i32) {
    %c0_i32 = arith.constant 0 : i32
    %c0_i32_0 = arith.constant 0 : i32
    %c0_i32_1 = arith.constant 0 : i32
    %c0_i32_2 = arith.constant 0 : i32
    return %c0_i32, %c0_i32_0, %c0_i32_1 : i32, i32, i32
  }
  func.func @transform_5(%arg0: i32) -> (i32, i32) {
    %c0_i32 = arith.constant 0 : i32
    %c0_i32_0 = arith.constant 0 : i32
    %c0_i32_1 = arith.constant 0 : i32
    return %c0_i32, %c0_i32_0 : i32, i32
  }
  func.func @transform_6(%arg0: i32) -> (i32, i32) {
    %c0_i32 = arith.constant 0 : i32
    %c0_i32_0 = arith.constant 0 : i32
    %c0_i32_1 = arith.constant 0 : i32
    return %c0_i32, %c0_i32_0 : i32, i32
  }
  func.func @transform_7(%arg0: i32) -> (i32, i32) {
    %c0_i32 = arith.constant 0 : i32
    %c0_i32_0 = arith.constant 0 : i32
    %c0_i32_1 = arith.constant 0 : i32
    return %c0_i32, %c0_i32_0 : i32, i32
  }
  func.func @transform_8(%arg0: i32) -> (i32, i32) {
    %c0_i32 = arith.constant 0 : i32
    %c0_i32_0 = arith.constant 0 : i32
    %c0_i32_1 = arith.constant 0 : i32
    return %c0_i32, %c0_i32_0 : i32, i32
  }
  func.func @transform_9(%arg0: i32) -> (i32, i32) {
    %c0_i32 = arith.constant 0 : i32
    %c0_i32_0 = arith.constant 0 : i32
    %c0_i32_1 = arith.constant 0 : i32
    return %c0_i32, %c0_i32_0 : i32, i32
  }
  func.func @transform_10(%arg0: i32) -> (i32, i32) {
    %c0_i32 = arith.constant 0 : i32
    %c0_i32_0 = arith.constant 0 : i32
    %c0_i32_1 = arith.constant 0 : i32
    return %c0_i32, %c0_i32_0 : i32, i32
  }
  func.func @transform_11(%arg0: i32) -> (i32, i32) {
    %c0_i32 = arith.constant 0 : i32
    %c0_i32_0 = arith.constant 0 : i32
    %c0_i32_1 = arith.constant 0 : i32
    return %c0_i32, %c0_i32_0 : i32, i32
  }
  func.func @transform_12(%arg0: i32) -> (i32, i32, i32) {
    %c0_i32 = arith.constant 0 : i32
    %c0_i32_0 = arith.constant 0 : i32
    %c0_i32_1 = arith.constant 0 : i32
    %c0_i32_2 = arith.constant 0 : i32
    return %c0_i32, %c0_i32_0, %c0_i32_1 : i32, i32, i32
  }
  func.func @transform_13(%arg0: i32) -> (i32, i32, i32) {
    %c0_i32 = arith.constant 0 : i32
    %c0_i32_0 = arith.constant 0 : i32
    %c0_i32_1 = arith.constant 0 : i32
    return %arg0, %c0_i32, %c0_i32_0 : i32, i32, i32
  }
}

</mosaic_0001>

<bundles_post_ra>
// kernel: tpu_custom_call.1
= control target key start
LH: loop header
LB: loop body
LE: loop exit
PB: predicated region body
PF: predicated region fallthrough
CT: control target
= control target key end

     0   :  { %s5454_s0 = inlined_call_operand.hbm [shape: f32[2,8,128], index: 0, kind: input, shape index: {}]   ;;  %s5455_s1 = inlined_call_operand.hbm [shape: bf16[4,32,128], index: 1, kind: input, shape index: {}]   ;;  %s5456_s2 = inlined_call_operand.hbm [shape: bf16[4,32,128], index: 2, kind: input, shape index: {}]   ;;  %s5457_s3 = inlined_call_operand.hbm [shape: bf16[4,32,128], index: 3, kind: input, shape index: {}]   ;;  %s5458_s4 = inlined_call_operand.hbm [shape: bf16[4,32,128], index: 4, kind: input, shape index: {}]   ;;  %s5459_s5 = inlined_call_operand.hbm [shape: bf16[128,512], index: 5, kind: input, shape index: {}]   ;;  %s5460_s6 = inlined_call_operand.hbm [shape: bf16[512,128], index: 6, kind: input, shape index: {}]   ;;  %s5461_s7 = inlined_call_operand.hbm [shape: bf16[128,512], index: 7, kind: input, shape index: {}]   ;;  %s5462_s8 = inlined_call_operand.vmem [shape: f32[1,128], index: 8, kind: input, shape index: {}]   ;;  %s5463_s9 = inlined_call_operand.vmem [shape: f32[1,128], index: 9, kind: input, shape index: {}]   ;;  %s5464_s10 = inlined_call_operand.vmem [shape: f32[8,32], index: 10, kind: input, shape index: {}]   ;;  %s5465_s11 = inlined_call_operand.vmem [shape: f32[8,32], index: 11, kind: input, shape index: {}]   ;;  %s5466_s12 = inlined_call_operand.hbm [shape: bf16[4,32,32], index: 12, kind: input, shape index: {}]   ;;  %s5467_s13 = inlined_call_operand.hbm [shape: f32[2,8,128], index: 13, kind: output, shape index: {}]  }
   0x1   :  { %5476 = sst [smem:[#allocation24_spill]] %s5455_s1 }
   0x2   :  { %5477 = sst [smem:[#allocation25_spill]] %s5457_s3 }
   0x3   :  { %5478 = sst [smem:[#allocation26_spill]] %s5462_s8 }
   0x4   :  { %5479 = sst [smem:[#allocation27_spill]] %s5463_s9 }
   0x5   :  { %5480 = sst [smem:[#allocation28_spill]] %s5464_s10 }
   0x6   :  { %5481 = sst [smem:[#allocation29_spill]] %s5465_s11 }
   0x7   :  { %5482 = sst [smem:[#allocation30_spill]] %s5467_s13 }
   0x8   :  { %18 = vsyncpa [#allocation3], 0 }
   0x9   :  { %20 = vsyncpa [#allocation3 + $0x1], 0 }
   0xa   :  { %21 = vsyncpa [#allocation6], 0 }
   0xb   :  { %22 = vsyncpa [#allocation9], 0 }
   0xc   :  { %23 = vsyncpa [#allocation12], 0 }
   0xd   :  { %24 = vsyncpa [#allocation15], 0 }
   0xe   :  { %25 = vsyncpa [#allocation4], 0 }
   0xf   :  { %27 = vsyncpa [#allocation4 + $0x1], 0  ;;  %s4820_s25 = smov 0   ;;  %s4822_s26 = smov 0  }
  0x10   :  { %s4824_s27 = smov 0   ;;  %s4826_s28 = smov 0  }
  0x11 LB: > { %s4732_s29 = smov [#allocation5]   ;;  %s4841_s14 = sadd.s32 4294967295, %s4730_s28   ;;  %s4730_s28 = sphi %s4826_s28, %s5516_s28   ;;  %s4726_s27 = sphi %s4824_s27, %s5515_s27   ;;  %s4722_s26 = sphi %s4822_s26, %s5514_s26   ;;  %s4718_s25 = sphi %s4820_s25, %s5513_s25  }
  0x12   : > { %s354_s30 = sshll.u32 %s4732_s29, 4  ;;  %p3493_p0 = scmp.ge.s32.totalorder %s4730_s28, 1  ;;  %s4846_s30 = int_to_ptr.vmem [resolvable:$true] %s354_s30 }
  0x13   : > { %p5473_p1 = scmp.eq.s32.totalorder %s4841_s14, 0  ;;  %p342_p2 = scmp.lt.s32.totalorder %s4730_s28, 3 }
  0x14   : > { %s4733_s16 = smov [#allocation8]   ;;  %s4734_s19 = smov [#allocation11]  }
  0x15   : > { %p4848_p3 = pnand %p3493_p0, %p342_p2  ;;  %s380_s17 = sshll.u32 %s4733_s16, 4  ;;  %s4861_s17 = int_to_ptr.vmem [resolvable:$true] %s380_s17 }
  0x16   : > { %s406_s20 = sshll.u32 %s4734_s19, 4  ;;  %s5485_s1 = sld [smem:[#allocation24_spill]]  ;;  %s4863_s20 = int_to_ptr.vmem [resolvable:$true] %s406_s20 }
  0x17   : > { %s5483_s15 = scalar_select %p4848_p3, 1, 0 }
  0x18   : > { %p4090_p5 = pneg %p4848_p3 }
  0x1a   : > { %p4857_p6 = pnand %p4090_p5, %p5473_p1 }
  0x1c   : > { %s4394_s23 = scalar_lea.hbm %s5485_s1, 1024  ;;  %p4873_p8 = pneg %p4857_p6 }
  0x1d   : > { %p4395_p7 = scmp.ne.s32.totalorder %s5485_s1, %s4394_s23  ;;  %p4401_p11 = scmp.lt.u32.totalorder %s4394_s23, %s5485_s1 }
  0x1f   : > { %p4397_p9 = pnand %p4873_p8, %p4395_p7 }
  0x21   : > { %p4398_p10 = pneg %p4397_p9 }
  0x23   : > { %p4403_p12 = pnand %p4401_p11, %p4398_p10 }
  0x25   : > { %4406 = shalt.err (!%p4403_p12)
}
  0x26   : > { %s4407_s21 = scalar_lea.vmem %s4846_s30, 1024  ;;  %p4415_p5 = scmp.lt.s32.totalorder %s4846_s30, %s4846_s30 }
  0x27   : > { %p4408_p13 = scmp.ne.s32.totalorder %s4846_s30, %s4407_s21  ;;  %p4416_p4 = scmp.lt.s32.totalorder %s4407_s21, %s4407_s21 }
  0x29   : > { %p4410_p0 = pnand %p4408_p13, %p4873_p8  ;;  %p4417_p7 = por %p4416_p4, %p4415_p5 }
  0x2b   : > { %p4411_p2 = pneg %p4410_p0 }
  0x2d   : > { %p4418_p9 = pnand %p4417_p7, %p4411_p2 }
  0x2f   : > { %4421 = shalt.err (!%p4418_p9)
}
  0x30   : > { %s5469_s22 = smov 64   ;;  %s5471_s13 = smov 4  }
  0x31   : > { %4093 = dma.hbm_to_vmem [thread:$0]  (!%p4857_p6), %s5485_s1, 1024, %s4846_s30, [#allocation6], %s5469_s22, %s5469_s22, %s5471_s13  }
  0x32   : > { %s5487_s3 = sld [smem:[#allocation25_spill]] }
  0x38   : > { %s4422_s21 = scalar_lea.hbm %s5487_s3, 1024 }
  0x39   : > { %p4423_p4 = scmp.ne.s32.totalorder %s5487_s3, %s4422_s21  ;;  %p4429_p12 = scmp.lt.u32.totalorder %s4422_s21, %s5487_s3 }
  0x3b   : > { %p4425_p10 = pnand %p4423_p4, %p4873_p8 }
  0x3d   : > { %p4426_p11 = pneg %p4425_p10 }
  0x3f   : > { %p4431_p13 = pnand %p4429_p12, %p4426_p11 }
  0x41   : > { %4434 = shalt.err (!%p4431_p13)
}
  0x42   : > { %s4435_s30 = scalar_lea.vmem %s4861_s17, 1024  ;;  %p4443_p7 = scmp.lt.s32.totalorder %s4861_s17, %s4861_s17 }
  0x43   : > { %p4436_p0 = scmp.ne.s32.totalorder %s4861_s17, %s4435_s30  ;;  %p4444_p9 = scmp.lt.s32.totalorder %s4435_s30, %s4435_s30 }
  0x45   : > { %p4438_p2 = pnand %p4436_p0, %p4873_p8  ;;  %p4445_p4 = por %p4444_p9, %p4443_p7 }
  0x47   : > { %p4439_p5 = pneg %p4438_p2 }
  0x49   : > { %p4446_p10 = pnand %p4445_p4, %p4439_p5 }
  0x4b   : > { %4449 = shalt.err (!%p4446_p10)
}
  0x4c   : > { %4099 = dma.hbm_to_vmem [thread:$0]  (!%p4857_p6), %s5487_s3, 1024, %s4861_s17, [#allocation9], %s5469_s22, %s5469_s22, %s5471_s13  }
  0x4d   : > { %s4450_s23 = scalar_lea.hbm %s5459_s5, 4096 }
  0x4e   : > { %p4451_p11 = scmp.ne.s32.totalorder %s5459_s5, %s4450_s23  ;;  %p4457_p0 = scmp.lt.u32.totalorder %s4450_s23, %s5459_s5 }
  0x50   : > { %p4453_p12 = pnand %p4451_p11, %p4873_p8 }
  0x52   : > { %p4454_p13 = pneg %p4453_p12 }
  0x54   : > { %p4459_p2 = pnand %p4457_p0, %p4454_p13 }
  0x56   : > { %4462 = shalt.err (!%p4459_p2)
}
  0x57   : > { %s4463_s17 = scalar_lea.vmem %s4863_s20, 4096  ;;  %p4471_p4 = scmp.lt.s32.totalorder %s4863_s20, %s4863_s20 }
  0x58   : > { %p4464_p5 = scmp.ne.s32.totalorder %s4863_s20, %s4463_s17  ;;  %p4472_p10 = scmp.lt.s32.totalorder %s4463_s17, %s4463_s17 }
  0x5a   : > { %p4466_p7 = pnand %p4464_p5, %p4873_p8  ;;  %p4473_p11 = por %p4472_p10, %p4471_p4 }
  0x5c   : > { %p4467_p9 = pneg %p4466_p7 }
  0x5e   : > { %p4474_p12 = pnand %p4473_p11, %p4467_p9 }
  0x60   : > { %4477 = shalt.err (!%p4474_p12)
}
  0x61   : > { %s4737_s30 = smov 256   ;;  %s4738_s8 = smov 16  }
  0x62   : > { %4105 = dma.hbm_to_vmem [thread:$0]  (!%p4857_p6), %s5459_s5, 4096, %s4863_s20, [#allocation12], %s4737_s30, %s4737_s30, %s4738_s8  }
  0x63   : > { %s4739_s11 = smov [#allocation14]   ;;  %s4740_s24 = smov [#allocation7]  }
  0x64   : > { %s432_s23 = sshll.u32 %s4739_s11, 4  ;;  %s367_s29 = sshll.u32 %s4740_s24, 4  ;;  %s433_s23 = int_to_ptr.vmem [resolvable:$true] %s432_s23  ;;  %s368_s29 = int_to_ptr.vmem [resolvable:$true] %s367_s29 }
  0x65   : > { %s4478_s17 = scalar_lea.hbm %s5461_s7, 4096 }
  0x66   : > { %p4479_p13 = scmp.ne.s32.totalorder %s5461_s7, %s4478_s17  ;;  %p4485_p5 = scmp.lt.u32.totalorder %s4478_s17, %s5461_s7 }
  0x68   : > { %p4481_p0 = pnand %p4479_p13, %p4873_p8 }
  0x6a   : > { %p4482_p2 = pneg %p4481_p0 }
  0x6c   : > { %p4487_p7 = pnand %p4485_p5, %p4482_p2 }
  0x6e   : > { %4490 = shalt.err (!%p4487_p7)
}
  0x6f   : > { %s4491_s20 = scalar_lea.vmem %s433_s23, 4096  ;;  %p4499_p11 = scmp.lt.s32.totalorder %s433_s23, %s433_s23 }
  0x70   : > { %p4492_p9 = scmp.ne.s32.totalorder %s433_s23, %s4491_s20  ;;  %p4500_p12 = scmp.lt.s32.totalorder %s4491_s20, %s4491_s20 }
  0x72   : > { %p4494_p4 = pnand %p4492_p9, %p4873_p8  ;;  %p4501_p1 = por %p4500_p12, %p4499_p11 }
  0x74   : > { %p4495_p10 = pneg %p4494_p4 }
  0x76   : > { %p4502_p3 = pnand %p4501_p1, %p4495_p10 }
  0x78   : > { %4505 = shalt.err (!%p4502_p3)
}
  0x79   : > { %4111 = dma.hbm_to_vmem [thread:$0]  (!%p4857_p6), %s5461_s7, 4096, %s433_s23, [#allocation15], %s4737_s30, %s4737_s30, %s4738_s8  }
  0x7a   : > { %s4506_s9 = scalar_lea.hbm %s5456_s2, 1024 }
  0x7b   : > { %p4507_p13 = scmp.ne.s32.totalorder %s5456_s2, %s4506_s9  ;;  %p4513_p3 = scmp.lt.u32.totalorder %s4506_s9, %s5456_s2 }
  0x7d   : > { %p4509_p0 = pnand %p4507_p13, %p4873_p8 }
  0x7f   : > { %p4510_p1 = pneg %p4509_p0 }
  0x81   : > { %p4515_p2 = pnand %p4513_p3, %p4510_p1 }
  0x83   : > { %4518 = shalt.err (!%p4515_p2)
}
  0x84   : > { %s4519_s21 = scalar_lea.vmem %s368_s29, 1024  ;;  %p4527_p4 = scmp.lt.s32.totalorder %s368_s29, %s368_s29 }
  0x85   : > { %p4520_p5 = scmp.ne.s32.totalorder %s368_s29, %s4519_s21  ;;  %p4528_p10 = scmp.lt.s32.totalorder %s4519_s21, %s4519_s21 }
  0x87   : > { %p4522_p7 = pnand %p4520_p5, %p4873_p8  ;;  %p4529_p11 = por %p4528_p10, %p4527_p4 }
  0x89   : > { %p4523_p9 = pneg %p4522_p7 }
  0x8b   : > { %p4530_p12 = pnand %p4529_p11, %p4523_p9 }
  0x8d   : > { %4533 = shalt.err (!%p4530_p12)
}
  0x8e   : > { %s5488_s30 = smov 4   ;;  %s5489_s8 = smov 64  }
  0x8f   : > { %4096 = dma.hbm_to_vmem [thread:$0]  (!%p4857_p6), %s5456_s2, 1024, %s368_s29, [#allocation6], %s5489_s8, %s5489_s8, %s5488_s30  }
  0x90   : > { %s4741_s20 = smov [#allocation10]   ;;  %s4742_s13 = smov [#allocation13]  }
  0x91   : > { %s393_s22 = sshll.u32 %s4741_s20, 4  ;;  %s419_s1 = sshll.u32 %s4742_s13, 4  ;;  %s394_s22 = int_to_ptr.vmem [resolvable:$true] %s393_s22  ;;  %s420_s1 = int_to_ptr.vmem [resolvable:$true] %s419_s1 }
  0x92   : > { %s4534_s10 = scalar_lea.hbm %s5458_s4, 1024 }
  0x93   : > { %p4535_p13 = scmp.ne.s32.totalorder %s5458_s4, %s4534_s10  ;;  %p4541_p3 = scmp.lt.u32.totalorder %s4534_s10, %s5458_s4 }
  0x95   : > { %p4537_p0 = pnand %p4535_p13, %p4873_p8 }
  0x97   : > { %p4538_p1 = pneg %p4537_p0 }
  0x99   : > { %p4543_p2 = pnand %p4541_p3, %p4538_p1 }
  0x9b   : > { %4546 = shalt.err (!%p4543_p2)
}
  0x9c   : > { %s4547_s29 = scalar_lea.vmem %s394_s22, 1024  ;;  %p4555_p4 = scmp.lt.s32.totalorder %s394_s22, %s394_s22 }
  0x9d   : > { %p4548_p5 = scmp.ne.s32.totalorder %s394_s22, %s4547_s29  ;;  %p4556_p10 = scmp.lt.s32.totalorder %s4547_s29, %s4547_s29 }
  0x9f   : > { %p4550_p7 = pnand %p4548_p5, %p4873_p8  ;;  %p4557_p11 = por %p4556_p10, %p4555_p4 }
  0xa1   : > { %p4551_p9 = pneg %p4550_p7 }
  0xa3   : > { %p4558_p12 = pnand %p4557_p11, %p4551_p9 }
  0xa5   : > { %4561 = shalt.err (!%p4558_p12)
}
  0xa6   : > { %4102 = dma.hbm_to_vmem [thread:$0]  (!%p4857_p6), %s5458_s4, 1024, %s394_s22, [#allocation9], %s5489_s8, %s5489_s8, %s5488_s30  }
  0xa7   : > { %s4562_s3 = scalar_lea.hbm %s5460_s6, 4096 }
  0xa8   : > { %p4563_p13 = scmp.ne.s32.totalorder %s5460_s6, %s4562_s3  ;;  %p4569_p3 = scmp.lt.u32.totalorder %s4562_s3, %s5460_s6 }
  0xaa   : > { %p4565_p0 = pnand %p4563_p13, %p4873_p8 }
  0xac   : > { %p4566_p1 = pneg %p4565_p0 }
  0xae   : > { %p4571_p2 = pnand %p4569_p3, %p4566_p1 }
  0xb0   : > { %4574 = shalt.err (!%p4571_p2)
}
  0xb1   : > { %s4575_s19 = scalar_lea.vmem %s420_s1, 4096  ;;  %p4583_p4 = scmp.lt.s32.totalorder %s420_s1, %s420_s1 }
  0xb2   : > { %p4576_p5 = scmp.ne.s32.totalorder %s420_s1, %s4575_s19  ;;  %p4584_p10 = scmp.lt.s32.totalorder %s4575_s19, %s4575_s19 }
  0xb4   : > { %p4578_p7 = pnand %p4576_p5, %p4873_p8  ;;  %p4585_p11 = por %p4584_p10, %p4583_p4 }
  0xb6   : > { %p4579_p9 = pneg %p4578_p7 }
  0xb8   : > { %p4586_p12 = pnand %p4585_p11, %p4579_p9 }
  0xba   : > { %4589 = shalt.err (!%p4586_p12)
}
  0xbb   : > { %4108 = dma.hbm_to_vmem [thread:$0]  (!%p4857_p6), %s5460_s6, 4096, %s420_s1, [#allocation12], %s5489_s8, %s5489_s8, %s5488_s30  }
  0xbc   : > { %s4743_s29 = smov [#allocation16]   ;;  %s4590_s13 = scalar_lea.hbm %s5466_s12, 1024 }
  0xbd   : > { %s457_s23 = sshll.u32 %s4743_s29, 4  ;;  %p4591_p13 = scmp.ne.s32.totalorder %s5466_s12, %s4590_s13  ;;  %s458_s23 = int_to_ptr.vmem [resolvable:$true] %s457_s23 }
  0xbe   : > { %p4597_p3 = scmp.lt.u32.totalorder %s4590_s13, %s5466_s12 }
  0xbf   : > { %p4593_p0 = pnand %p4591_p13, %p4873_p8 }
  0xc1   : > { %p4594_p1 = pneg %p4593_p0 }
  0xc3   : > { %p4599_p2 = pnand %p4597_p3, %p4594_p1 }
  0xc5   : > { %4602 = shalt.err (!%p4599_p2)
}
  0xc6   : > { %s4603_s1 = scalar_lea.vmem %s458_s23, 1024  ;;  %p4611_p4 = scmp.lt.s32.totalorder %s458_s23, %s458_s23 }
  0xc7   : > { %p4604_p5 = scmp.ne.s32.totalorder %s458_s23, %s4603_s1  ;;  %p4612_p10 = scmp.lt.s32.totalorder %s4603_s1, %s4603_s1 }
  0xc9   : > { %p4606_p7 = pnand %p4604_p5, %p4873_p8  ;;  %p4613_p11 = por %p4612_p10, %p4611_p4 }
  0xcb   : > { %p4607_p9 = pneg %p4606_p7 }
  0xcd   : > { %p4614_p12 = pnand %p4613_p11, %p4607_p9 }
  0xcf   : > { %4617 = shalt.err (!%p4614_p12)
}
  0xd0   : > { %4114 = dma.hbm_to_vmem [thread:$0]  (!%p4857_p6), %s5466_s12, 1024, %s458_s23, [#allocation15], %s5489_s8, %s5489_s8, %s5488_s30  }
  0xd1   : > { %s3492_s18 = sadd.s32 4294967294, %s4730_s28   ;;  %s5050_s16 = sadd.s32 1, %s4730_s28  }
  0xd2   : > { %s37_s22 = ssub.s32 %s4730_s28, %s5050_s16  ;;  %s40_s21 = sadd.s32 1, %s4726_s27 }
  0xd3   : > { %p38_p8 = scmp.eq.s32.totalorder %s37_s22, 0  ;;  %p47_p13 = scmp.ne.s32.totalorder %s4726_s27, %s4722_s26 }
  0xd4   : > { %p48_p0 = scmp.eq.s32.totalorder %s4730_s28, 0  ;;  %p53_p1 = scmp.ne.s32.totalorder %s4722_s26, %s4718_s25 }
  0xd5   : > { %s5061_s29 = scalar_select %p38_p8, %s4726_s27, %s40_s21  }
  0xd6   : > { %p5063_p3 = por %p48_p0, %p47_p13  ;;  %p5491_p2 = scmp.eq.s32.totalorder %s4841_s14, 0 }
  0xd7   : > { %p329_p5 = scmp.eq.s32.totalorder %s4841_s14, 1  ;;  %p335_p7 = scmp.eq.s32.totalorder %s3492_s18, 1 }
  0xd8   : > { %p5069_p6 = por %p5491_p2, %p53_p1  ;;  %p4131_p9 = scmp.lt.s32.totalorder %s4730_s28, 2 }
  0xd9   : > { %s471_s8 = sand.u32 1, %s4726_s27   ;;  %p5076_p4 = por %p329_p5, %p47_p13 }
  0xda   : > { %p5080_p10 = por %p335_p7, %p53_p1  ;;  %s3503_s13 = sshll.u32 %s471_s8, 3 }
  0xdb   : > { %s5493_s23 = scalar_select %p5076_p4, 1, 0 }
  0xdc   : > { %s5494_s20 = scalar_select %p5080_p10, 1, 0 }
  0xdd   : > { %s3504_s3 = sshll.u32 %s4730_s28, 7  ;;  %s475_s1 = scalar_lea.vmem [#allocation2], %s3503_s13 }
  0xde   : > { %s5088_s11 = scalar_lea.hbm %s5454_s0, %s3504_s3  ;;  %s482_s24 = sshll.u32 %s475_s1, 4  ;;  %s5090_s24 = int_to_ptr.vmem [resolvable:$true] %s482_s24 }
  0xdf   : > { %p5094_p11 = pnand %p4131_p9, %p5063_p3  ;;  %s472_s18 = scalar_lea.sflag [#allocation3], %s471_s8 }
  0xe0   : > { %s4618_s22 = scalar_lea.hbm %s5088_s11, 128  ;;  %s4623_s3 = scalar_lea.hbm %s5454_s0, 256 }
  0xe1   : > { %p4619_p12 = scmp.ne.s32.totalorder %s5088_s11, %s4618_s22  ;;  %p4620_p8 = pneg %p5094_p11 }
  0xe2   : > { %p4624_p1 = scmp.lt.u32.totalorder %s5088_s11, %s5454_s0  ;;  %p4625_p3 = scmp.lt.u32.totalorder %s4623_s3, %s4618_s22 }
  0xe3   : > { %p4621_p13 = pnand %p4620_p8, %p4619_p12  ;;  %p4627_p5 = scmp.lt.u32.totalorder %s4618_s22, %s5088_s11 }
  0xe4   : > { %p4626_p2 = por %p4625_p3, %p4624_p1 }
  0xe5   : > { %p4622_p0 = pneg %p4621_p13 }
  0xe6   : > { %p4628_p7 = por %p4627_p5, %p4626_p2 }
  0xe8   : > { %p4629_p9 = pnand %p4628_p7, %p4622_p0 }
  0xea   : > { %4632 = shalt.err (!%p4629_p9)
}
  0xeb   : > { %s4633_s8 = scalar_lea.vmem %s5090_s24, 128  ;;  %s4744_s10 = smov [#allocation2]  }
  0xec   : > { %p4634_p12 = scmp.ne.s32.totalorder %s5090_s24, %s4633_s8  ;;  %s4638_s1 = sshll.u32 %s4744_s10, 4  ;;  %s4639_s1 = int_to_ptr.vmem [resolvable:$false] %s4638_s1 }
  0xed   : > { %s4640_s21 = scalar_lea.vmem %s4639_s1, 256  ;;  %p4641_p4 = scmp.lt.s32.totalorder %s5090_s24, %s4639_s1 }
  0xee   : > { %p4636_p13 = pnand %p4634_p12, %p4620_p8  ;;  %p4642_p1 = scmp.lt.s32.totalorder %s4640_s21, %s4633_s8 }
  0xf0   : > { %p4637_p10 = pneg %p4636_p13  ;;  %p4643_p3 = por %p4642_p1, %p4641_p4 }
  0xf2   : > { %p4644_p2 = pnand %p4643_p3, %p4637_p10 }
  0xf4   : > { %4647 = shalt.err (!%p4644_p2)
}
  0xf5   : > { %4118 = dma.hbm_to_vmem [thread:$0]  (!%p5094_p11), %s5088_s11, 128, %s5090_s24, %s472_s18  }
  0xf6   : > { %p5496_p0 = scmp.ne.s32.totalorder %s5483_s15, 0 }
  0xf7   : > { %s5126_s22 = sand.u32 (!%p5496_p0), 1, %s4722_s26  }
  0xf8   : > { %491 = sbr.rel (%p5496_p0) target bundleno = 2535 (0x9e7), region = 72  ;;  %s3506_s13 = sshll.u32 (!%p5496_p0), %s5126_s22, 3 }
  0xf9   : > { %s494_s3 = scalar_lea.sflag (!%p5496_p0), [#allocation3], %s5126_s22  ;;  %s5132_s17 = scalar_lea.vmem (!%p5496_p0), [#allocation2], %s3506_s13 }
  0xff   : > { %4693 = dma.done.wait (%p5069_p6), %s494_s3, 128  }
 0x100   : > { %4695 = vsyncadd (%p5069_p6), %s494_s3, 4294967168  ;;  %p5497_p4 = scmp.eq.s32.totalorder %s4841_s14, 0 }
 0x102   : > { %4697 = dma.done.wait (%p5497_p4), [#allocation6], 2048   ;;  %p5498_p10 = pmov %p5497_p4 }
 0x103   : > { %p5499_p11 = pmov %p5497_p4 }
 0x104   : > { %4699 = vsyncadd (%p5498_p10), [#allocation6], 4294965248 }
 0x105   : > { %4701 = dma.done.wait (%p5499_p11), [#allocation9], 2048   ;;  %p5500_p8 = pmov %p5497_p4 }
 0x106   : > { %p5501_p5 = pmov %p5497_p4 }
 0x107   : > { %4703 = vsyncadd (%p5500_p8), [#allocation9], 4294965248 }
 0x108   : > { %4705 = dma.done.wait (%p5501_p5), [#allocation12], 8192   ;;  %p5502_p7 = pmov %p5497_p4 }
 0x109   : > { %p5503_p6 = pmov %p5497_p4 }
 0x10a   : > { %4707 = vsyncadd (%p5502_p7), [#allocation12], 4294959104 }
 0x10b   : > { %4709 = dma.done.wait (%p5503_p6), [#allocation15], 5120   ;;  %p5504_p9 = pmov %p5497_p4 }
 0x10c   : > { %v573_v0 = vld [vmem:[%s5132_s17] sm:$0xff]  ;;  %v4189_v2 = vld [vmem:[#allocation5] sm:$0xff]   ;;  %v4745_v4 = vmov 0.0   ;;  %v4191_v5 = vld [vmem:[#allocation5 + $0x8] sm:$0xff]   ;;  %vm4746_vm0 = vmmov 0   ;;  %s5505_s11 = sld [smem:[#allocation26_spill]] }
 0x10d   : > { %4711 = vsyncadd (%p5504_p9), [#allocation15], 4294962176  ;;  %v575_v1 = vmul.f32 %v573_v0, %v573_v0  ;;  %v4190_v3 = vld [vmem:[#allocation5 + $0x10] sm:$0xff]   ;;  %3814 = vmatprep.subr.bf16.mxu0 %v4745_v4  ;;  %3822 = vmatprep.subr.bf16.mxu1 %v4745_v4  ;;  %v4192_v6 = vld [vmem:[#allocation5 + $0x18] sm:$0xff]   ;;  %vm1297_vm1 = vcmask 261120   ;;  %vm1968_vm2 = vcmask 1043456  }
 0x10e   : > { %3815 = vmatpush3.bf16.xpose.msra.mxu0 %v4189_v2  ;;  %3823 = vmatpush3.bf16.xpose.msra.mxu1 %v4190_v3  ;;  %v4193_v14 = vld [vmem:[#allocation5 + $0x20] sm:$0xff]   ;;  %v4194_v15 = vld [vmem:[#allocation5 + $0x30] sm:$0xff]   ;;  %v4195_v17 = vld [vmem:[#allocation5 + $0x28] sm:$0xff]   ;;  %s5506_s18 = sld [smem:[#allocation28_spill]]  ;;  %s5507_s10 = sld [smem:[#allocation29_spill]]  ;;  %vm1912_vm4 = vcmask 64512  }
 0x10f   : > { %576 = vadd.xlane.f32.xlu0 %v575_v1  ;;  %3816 = vmatprep.subr.bf16.mxu0 %v4745_v4  ;;  %v4196_v18 = vld [vmem:[#allocation5 + $0x38] sm:$0xff]   ;;  %v4197_v19 = vld [vmem:[#allocation7] sm:$0xff]   ;;  %v4198_v20 = vld [vmem:[#allocation7 + $0x10] sm:$0xff]   ;;  %s5508_s3 = sld [smem:[#allocation27_spill]]  ;;  %s571_s15 = scalar_lea.vmem [#allocation17], %s3506_s13 }
 0x110   : > { %3824 = vmatprep.subr.bf16.mxu1 %v4745_v4  ;;  %3818 = vmatprep.mubr.msk.bf16.mxu0 %vm4746_vm0, %v4745_v4  ;;  %v4199_v21 = vld [vmem:[#allocation7 + $0x8] sm:$0xff]   ;;  %v4200_v22 = vld [vmem:[#allocation7 + $0x18] sm:$0xff]   ;;  %v4201_v23 = vld [vmem:[#allocation7 + $0x20] sm:$0xff]   ;;  %s3346_s30 = sshll.u32 %s571_s15, 4  ;;  %s5509_s19 = sld [smem:[#allocation30_spill]]  ;;  %s5412_s30 = int_to_ptr.vmem [resolvable:$true] %s3346_s30 }
 0x111   : > { %3826 = vmatprep.mubr.msk.bf16.mxu1 %vm4746_vm0, %v4745_v4  ;;  %v4202_v24 = vld [vmem:[#allocation7 + $0x30] sm:$0xff]   ;;  %v4203_v25 = vld [vmem:[#allocation7 + $0x28] sm:$0xff]   ;;  %v4204_v26 = vld [vmem:[#allocation7 + $0x38] sm:$0xff]   ;;  %s3333_s9 = scalar_lea.sflag [#allocation4], %s5126_s22  ;;  %s4648_s8 = scalar_lea.vmem %s5412_s30, 128 }
 0x112   : > { %v3516_v11 = vld [vmem:[%s5505_s11] ss:$0 sm:$0xff]  ;;  %v4205_v27 = vld [vmem:[#allocation8] sm:$0xff]   ;;  %v4207_v29 = vld [vmem:[#allocation8 + $0x8] sm:$0xff]   ;;  %p4649_p12 = scmp.ne.s32.totalorder %s5412_s30, %s4648_s8  ;;  %p5510_p13 = scmp.ne.s32.totalorder %s5493_s23, 0 }
 0x113   : > { %v4206_v28 = vld [vmem:[#allocation8 + $0x10] sm:$0xff]   ;;  %v4208_v30 = vld [vmem:[#allocation8 + $0x18] sm:$0xff]   ;;  %v4209_v31 = vld [vmem:[#allocation8 + $0x20] sm:$0xff]  }
 0x114   : > { %v4210_v32 = vld [vmem:[#allocation8 + $0x30] sm:$0xff]   ;;  %v4211_v33 = vld [vmem:[#allocation8 + $0x28] sm:$0xff]   ;;  %v4212_v34 = vld [vmem:[#allocation8 + $0x38] sm:$0xff]   ;;  %p4650_p1 = pnand %p4649_p12, %p5510_p13 }
 0x115   : > { %v4213_v35 = vld [vmem:[#allocation16] sm:$0xff]   ;;  %v4214_v36 = vld [vmem:[#allocation16 + $0x10] sm:$0xff]   ;;  %v4215_v37 = vld [vmem:[#allocation16 + $0x8] sm:$0xff]  }
 0x116   : > { %3817 = vmatpush3.bf16.xpose.msra.mxu0 %v4191_v5  ;;  %3825 = vmatpush3.bf16.xpose.msra.mxu1 %v4192_v6  ;;  %v4216_v38 = vld [vmem:[#allocation16 + $0x18] sm:$0xff]   ;;  %v4217_v41 = vld [vmem:[#allocation16 + $0x20] sm:$0xff]   ;;  %v4218_v42 = vld [vmem:[#allocation16 + $0x30] sm:$0xff]   ;;  %p4651_p3 = pneg %p4650_p1 }
 0x117   : > { %3830 = vmatprep.subr.bf16.mxu0 %v4745_v4  ;;  %3838 = vmatprep.subr.bf16.mxu1 %v4745_v4  ;;  %v4219_v51 = vld [vmem:[#allocation16 + $0x28] sm:$0xff]   ;;  %v4220_v52 = vld [vmem:[#allocation16 + $0x38] sm:$0xff]  }
 0x19c   : > { %v577_v7 = vpop.xlane.xlu0 %576 }
 0x19d   : > { %v579_v8 = vmul.f32 0.0078125, %v577_v7 }
 0x19f   : > { %v580_v9 = vadd.f32 1e-05, %v579_v8 }
 0x1a1   : > { %4357 = vrsqrt.f32 %v580_v9 }
 0x1ab   : > { %v4358_v10 = vpop.eup %4357 }
 0x1ac   : > { %v582_v12 = vmul.f32 %v4358_v10, %v573_v0 }
 0x1ae   : > { %v589_v13 = vmul.f32 %v3516_v11, %v582_v12 }
 0x1b0   : > { %v5168_v16 = vpack.c.bf16 %v589_v13, %v589_v13 }
 0x1b2   : > { %3819 = vmatmul.mubr.bf16.vlgmr.msra.gmra.mrb[0].mxu0 %v5168_v16  ;;  %3827 = vmatmul.mubr.bf16.vlgmr.msra.gmra.mrb[0].mxu1 %v5168_v16 }
 0x1b3   : > { %3831 = vmatpush3.bf16.xpose.msra.mxu0 %v4193_v14  ;;  %3839 = vmatpush3.bf16.xpose.msra.mxu1 %v4194_v15 }
 0x1b4   : > { %3832 = vmatprep.subr.bf16.mxu0 %v4745_v4  ;;  %3840 = vmatprep.subr.bf16.mxu1 %v4745_v4 }
 0x1b5   : > { %3834 = vmatprep.mubr.msk.bf16.mxu0 %vm4746_vm0, %v4745_v4  ;;  %3842 = vmatprep.mubr.msk.bf16.mxu1 %vm4746_vm0, %v4745_v4 }
 0x1bb   : > { %3833 = vmatpush3.bf16.xpose.msra.mxu0 %v4195_v17  ;;  %3841 = vmatpush3.bf16.xpose.msra.mxu1 %v4196_v18 }
 0x1bc   : > { %3846 = vmatprep.subr.bf16.mxu0 %v4745_v4  ;;  %3854 = vmatprep.subr.bf16.mxu1 %v4745_v4 }
 0x1c2   : > { %3835 = vmatmul.mubr.bf16.vlgmr.msra.gmra.mrb[4].mxu0 %v5168_v16  ;;  %3843 = vmatmul.mubr.bf16.vlgmr.msra.gmra.mrb[4].mxu1 %v5168_v16 }
 0x1c3   : > { %3847 = vmatpush3.bf16.xpose.msra.mxu0 %v4197_v19  ;;  %3855 = vmatpush3.bf16.xpose.msra.mxu1 %v4198_v20 }
 0x1c4   : > { %3848 = vmatprep.subr.bf16.mxu0 %v4745_v4  ;;  %3856 = vmatprep.subr.bf16.mxu1 %v4745_v4 }
 0x1c5   : > { %3850 = vmatprep.mubr.msk.bf16.mxu0 %vm4746_vm0, %v4745_v4  ;;  %3858 = vmatprep.mubr.msk.bf16.mxu1 %vm4746_vm0, %v4745_v4 }
 0x1cb   : > { %3849 = vmatpush3.bf16.xpose.msra.mxu0 %v4199_v21  ;;  %3857 = vmatpush3.bf16.xpose.msra.mxu1 %v4200_v22 }
 0x1cc   : > { %3862 = vmatprep.subr.bf16.mxu0 %v4745_v4  ;;  %3870 = vmatprep.subr.bf16.mxu1 %v4745_v4 }
 0x1d2   : > { %3851 = vmatmul.mubr.bf16.vlgmr.msra.gmra.mrb[8].mxu0 %v5168_v16  ;;  %3859 = vmatmul.mubr.bf16.vlgmr.msra.gmra.mrb[8].mxu1 %v5168_v16 }
 0x1d3   : > { %3863 = vmatpush3.bf16.xpose.msra.mxu0 %v4201_v23  ;;  %3871 = vmatpush3.bf16.xpose.msra.mxu1 %v4202_v24 }
 0x1d4   : > { %3864 = vmatprep.subr.bf16.mxu0 %v4745_v4  ;;  %3872 = vmatprep.subr.bf16.mxu1 %v4745_v4 }
 0x1d5   : > { %3866 = vmatprep.mubr.msk.bf16.mxu0 %vm4746_vm0, %v4745_v4  ;;  %3874 = vmatprep.mubr.msk.bf16.mxu1 %vm4746_vm0, %v4745_v4 }
 0x1db   : > { %3865 = vmatpush3.bf16.xpose.msra.mxu0 %v4203_v25  ;;  %3873 = vmatpush3.bf16.xpose.msra.mxu1 %v4204_v26 }
 0x1dc   : > { %3878 = vmatprep.subr.bf16.mxu0 %v4745_v4  ;;  %3886 = vmatprep.subr.bf16.mxu1 %v4745_v4 }
 0x1e2   : > { %3867 = vmatmul.mubr.bf16.vlgmr.msra.gmra.mrb[12].mxu0 %v5168_v16  ;;  %3875 = vmatmul.mubr.bf16.vlgmr.msra.gmra.mrb[12].mxu1 %v5168_v16 }
 0x1e3   : > { %3879 = vmatpush3.bf16.xpose.msra.mxu0 %v4205_v27  ;;  %3887 = vmatpush3.bf16.xpose.msra.mxu1 %v4206_v28 }
 0x1e4   : > { %3880 = vmatprep.subr.bf16.mxu0 %v4745_v4  ;;  %3888 = vmatprep.subr.bf16.mxu1 %v4745_v4 }
 0x1e5   : > { %3882 = vmatprep.mubr.msk.bf16.mxu0 %vm4746_vm0, %v4745_v4  ;;  %3890 = vmatprep.mubr.msk.bf16.mxu1 %vm4746_vm0, %v4745_v4 }
 0x1eb   : > { %3881 = vmatpush3.bf16.xpose.msra.mxu0 %v4207_v29  ;;  %3889 = vmatpush3.bf16.xpose.msra.mxu1 %v4208_v30 }
 0x1ec   : > { %3894 = vmatprep.subr.bf16.mxu0 %v4745_v4  ;;  %3902 = vmatprep.subr.bf16.mxu1 %v4745_v4 }
 0x1f2   : > { %3883 = vmatmul.mubr.bf16.vlgmr.msra.gmra.mrb[16].mxu0 %v5168_v16  ;;  %3891 = vmatmul.mubr.bf16.vlgmr.msra.gmra.mrb[16].mxu1 %v5168_v16 }
 0x1f3   : > { %3895 = vmatpush3.bf16.xpose.msra.mxu0 %v4209_v31  ;;  %3903 = vmatpush3.bf16.xpose.msra.mxu1 %v4210_v32 }
 0x1f4   : > { %3896 = vmatprep.subr.bf16.mxu0 %v4745_v4  ;;  %3904 = vmatprep.subr.bf16.mxu1 %v4745_v4 }
 0x1f5   : > { %3898 = vmatprep.mubr.msk.bf16.mxu0 %vm4746_vm0, %v4745_v4  ;;  %3906 = vmatprep.mubr.msk.bf16.mxu1 %vm4746_vm0, %v4745_v4 }
 0x1fb   : > { %3897 = vmatpush3.bf16.xpose.msra.mxu0 %v4211_v33  ;;  %3905 = vmatpush3.bf16.xpose.msra.mxu1 %v4212_v34 }
 0x1fc   : > { %3910 = vmatprep.subr.bf16.mxu0 %v4745_v4  ;;  %3918 = vmatprep.subr.bf16.mxu1 %v4745_v4 }
 0x202   : > { %3899 = vmatmul.mubr.bf16.vlgmr.msra.gmra.mrb[20].mxu0 %v5168_v16  ;;  %3907 = vmatmul.mubr.bf16.vlgmr.msra.gmra.mrb[20].mxu1 %v5168_v16 }
 0x203   : > { %3911 = vmatpush3.bf16.msra.mxu0 %v4213_v35  ;;  %3919 = vmatpush3.bf16.msra.mxu1 %v4214_v36 }
 0x204   : > { %3912 = vmatprep.subr.bf16.mxu0 %v4745_v4  ;;  %3920 = vmatprep.subr.bf16.mxu1 %v4745_v4 }
 0x205   : > { %3914 = vmatprep.mubr.msk.bf16.mxu0 %vm4746_vm0, %v4745_v4  ;;  %3922 = vmatprep.mubr.msk.bf16.mxu1 %vm4746_vm0, %v4745_v4 }
 0x207   : > { %3913 = vmatpush3.bf16.msra.mxu0 %v4215_v37  ;;  %3921 = vmatpush3.bf16.msra.mxu1 %v4216_v38 }
 0x208   : > { %3926 = vmatprep.subr.bf16.mxu0 %v4745_v4  ;;  %3934 = vmatprep.subr.bf16.mxu1 %v4745_v4 }
 0x285   : > { %v5230_v39 = vpop.f32.mrb[0].mxu0  ;;  %v5232_v40 = vpop.f32.mrb[0].mxu1 }
 0x286   : > { %v1281_v43 = vpack.c.bf16 %v5230_v39, %v5230_v39  ;;  %v1282_v44 = vpack.c.bf16 %v5232_v40, %v5232_v40  ;;  %v3820_v45 = vpop.f32.mrb[1].mxu0  ;;  %v3828_v46 = vpop.f32.mrb[1].mxu1 }
 0x287   : > { %v656_v47 = vpop.f32.mrb[2].mxu0  ;;  %v708_v48 = vpop.f32.mrb[2].mxu1 }
 0x288   : > { %v3821_v49 = vpop.f32.mrb[3].mxu0  ;;  %v3829_v50 = vpop.f32.mrb[3].mxu1  ;;  %3915 = vmatmul.mubr.msk.bf16.vlgmr.msra.gmra.mrb[24].mxu0 %vm1297_vm1, %v1281_v43  ;;  %3923 = vmatmul.mubr.msk.bf16.vlgmr.msra.gmra.mrb[24].mxu1 %vm1297_vm1, %v1282_v44  ;;  %v1264_v43 = vld [vmem:[%s5507_s10] sm:$0xff] }
 0x289   : > { %3927 = vmatpush3.bf16.msra.mxu0 %v4217_v41  ;;  %3935 = vmatpush3.bf16.msra.mxu1 %v4218_v42 }
 0x28a   : > { %3928 = vmatprep.subr.bf16.mxu0 %v4745_v4  ;;  %3936 = vmatprep.subr.bf16.mxu1 %v4745_v4 }
 0x28b   : > { %3930 = vmatprep.mubr.msk.bf16.mxu0 %vm4746_vm0, %v4745_v4  ;;  %3938 = vmatprep.mubr.msk.bf16.mxu1 %vm4746_vm0, %v4745_v4 }
 0x28d   : > { %3929 = vmatpush3.bf16.msra.mxu0 %v4219_v51  ;;  %3937 = vmatpush3.bf16.msra.mxu1 %v4220_v52 }
 0x28e   : > { %3942 = vmatprep.subr.bf16.mxu0 %v4745_v4  ;;  %3950 = vmatprep.subr.bf16.mxu1 %v4745_v4 }
 0x295   : > { %v5248_v53 = vpop.f32.mrb[4].mxu0  ;;  %v5250_v54 = vpop.f32.mrb[4].mxu1 }
 0x296   : > { %v1283_v55 = vpack.c.bf16 %v5248_v53, %v5248_v53  ;;  %v1284_v56 = vpack.c.bf16 %v5250_v54, %v5250_v54  ;;  %v3836_v57 = vpop.f32.mrb[5].mxu0  ;;  %v3844_v58 = vpop.f32.mrb[5].mxu1 }
 0x297   : > { %v760_v59 = vpop.f32.mrb[6].mxu0  ;;  %v812_v60 = vpop.f32.mrb[6].mxu1 }
 0x298   : > { %v3837_v61 = vpop.f32.mrb[7].mxu0  ;;  %v3845_v62 = vpop.f32.mrb[7].mxu1  ;;  %3931 = vmatmul.mubr.msk.bf16.vlgmr.msra.gmra.mrb[28].mxu0 %vm1297_vm1, %v1283_v55  ;;  %3939 = vmatmul.mubr.msk.bf16.vlgmr.msra.gmra.mrb[28].mxu1 %vm1297_vm1, %v1284_v56 }
 0x299   : > { %3943 = vmatpush3.bf16.msra.mxu0 %v4213_v35  ;;  %3951 = vmatpush3.bf16.msra.mxu1 %v4214_v36 }
 0x29a   : > { %3944 = vmatprep.subr.bf16.mxu0 %v4745_v4  ;;  %3952 = vmatprep.subr.bf16.mxu1 %v4745_v4 }
 0x29b   : > { %3946 = vmatprep.mubr.msk.bf16.mxu0 %vm4746_vm0, %v4745_v4  ;;  %3954 = vmatprep.mubr.msk.bf16.mxu1 %vm4746_vm0, %v4745_v4 }
 0x29d   : > { %3945 = vmatpush3.bf16.msra.mxu0 %v4215_v37  ;;  %3953 = vmatpush3.bf16.msra.mxu1 %v4216_v38 }
 0x29e   : > { %3958 = vmatprep.subr.bf16.mxu0 %v4745_v4  ;;  %3966 = vmatprep.subr.bf16.mxu1 %v4745_v4 }
 0x2a5   : > { %v5266_v63 = vpop.f32.mrb[8].mxu0  ;;  %v5268_v0 = vpop.f32.mrb[8].mxu1 }
 0x2a6   : > { %v1518_v1 = vpack.c.bf16 %v5266_v63, %v5266_v63  ;;  %v1519_v2 = vpack.c.bf16 %v5268_v0, %v5268_v0  ;;  %v3852_v3 = vpop.f32.mrb[9].mxu0  ;;  %v3860_v5 = vpop.f32.mrb[9].mxu1 }
 0x2a7   : > { %v880_v6 = vpop.f32.mrb[10].mxu0  ;;  %v932_v7 = vpop.f32.mrb[10].mxu1 }
 0x2a8   : > { %v3853_v8 = vpop.f32.mrb[11].mxu0  ;;  %v3861_v9 = vpop.f32.mrb[11].mxu1  ;;  %3947 = vmatmul.mubr.msk.bf16.vlgmr.msra.gmra.mrb[32].mxu0 %vm1297_vm1, %v1518_v1  ;;  %3955 = vmatmul.mubr.msk.bf16.vlgmr.msra.gmra.mrb[32].mxu1 %vm1297_vm1, %v1519_v2 }
 0x2a9   : > { %3959 = vmatpush3.bf16.msra.mxu0 %v4217_v41  ;;  %3967 = vmatpush3.bf16.msra.mxu1 %v4218_v42  ;;  %v1263_v42 = vld [vmem:[%s5506_s18] sm:$0xff] }
 0x2aa   : > { %3960 = vmatprep.subr.bf16.mxu0 %v4745_v4  ;;  %3968 = vmatprep.subr.bf16.mxu1 %v4745_v4  ;;  %v1506_v46 = vmul.f32 %v1263_v42, %v5230_v39  ;;  %v1507_v47 = vmul.f32 %v1263_v42, %v5232_v40  ;;  %v1508_v62 = vmul.f32 %v1263_v42, %v5248_v53 }
 0x2ab   : > { %3962 = vmatprep.mubr.msk.bf16.mxu0 %vm4746_vm0, %v4745_v4  ;;  %3970 = vmatprep.mubr.msk.bf16.mxu1 %vm4746_vm0, %v4745_v4  ;;  %v1509_v1 = vmul.f32 %v1263_v42, %v5250_v54 }
 0x2ad   : > { %3961 = vmatpush3.bf16.msra.mxu0 %v4219_v51  ;;  %3969 = vmatpush3.bf16.msra.mxu1 %v4220_v52 }
 0x2ae   : > { %3974 = vmatprep.subr.bf16.mxu0 %v4745_v4  ;;  %3980 = vmatprep.subr.bf16.mxu1 %v4745_v4 }
 0x2b5   : > { %v5284_v10 = vpop.f32.mrb[12].mxu0  ;;  %v5286_v11 = vpop.f32.mrb[12].mxu1 }
 0x2b6   : > { %v1520_v12 = vpack.c.bf16 %v5284_v10, %v5284_v10  ;;  %v1521_v13 = vpack.c.bf16 %v5286_v11, %v5286_v11  ;;  %v3868_v14 = vpop.f32.mrb[13].mxu0  ;;  %v3876_v15 = vpop.f32.mrb[13].mxu1 }
 0x2b7   : > { %v984_v16 = vpop.f32.mrb[14].mxu0  ;;  %v1036_v17 = vpop.f32.mrb[14].mxu1  ;;  %v1694_v15 = vmul.f32 %v1263_v42, %v5266_v63 }
 0x2b8   : > { %v3869_v18 = vpop.f32.mrb[15].mxu0  ;;  %v3877_v19 = vpop.f32.mrb[15].mxu1  ;;  %3963 = vmatmul.mubr.msk.bf16.vlgmr.msra.gmra.mrb[36].mxu0 %vm1297_vm1, %v1520_v12  ;;  %3971 = vmatmul.mubr.msk.bf16.vlgmr.msra.gmra.mrb[36].mxu1 %vm1297_vm1, %v1521_v13  ;;  %v1695_v16 = vmul.f32 %v1263_v42, %v5268_v0 }
 0x2b9   : > { %3976 = vmatprep.mubr.msk.bf16.mxu0 %vm4746_vm0, %v4745_v4  ;;  %3982 = vmatprep.mubr.msk.bf16.mxu1 %vm4746_vm0, %v4745_v4 }
 0x2c5   : > { %v5298_v20 = vpop.f32.mrb[16].mxu0  ;;  %v5300_v21 = vpop.f32.mrb[16].mxu1 }
 0x2c6   : > { %v3884_v22 = vpop.f32.mrb[17].mxu0  ;;  %v3892_v23 = vpop.f32.mrb[17].mxu1 }
 0x2c7   : > { %v1104_v24 = vpop.f32.mrb[18].mxu0  ;;  %v1156_v25 = vpop.f32.mrb[18].mxu1 }
 0x2c8   : > { %v3885_v26 = vpop.f32.mrb[19].mxu0  ;;  %v3893_v27 = vpop.f32.mrb[19].mxu1 }
 0x2d5   : > { %v1205_v28 = vpop.f32.mrb[20].mxu0  ;;  %v1257_v29 = vpop.f32.mrb[20].mxu1 }
 0x2d6   : > { %v1963_v30 = vpack.c.bf16 %v1205_v28, %v1205_v28  ;;  %v1964_v31 = vpack.c.bf16 %v1257_v29, %v1257_v29  ;;  %v3900_v32 = vpop.f32.mrb[21].mxu0  ;;  %v3908_v33 = vpop.f32.mrb[21].mxu1 }
 0x2d7   : > { %v1208_v34 = vpop.f32.mrb[22].mxu0  ;;  %v1260_v35 = vpop.f32.mrb[22].mxu1  ;;  %v1696_v33 = vmul.f32 %v1263_v42, %v5284_v10  ;;  %v1961_v10 = vpack.c.bf16 %v5298_v20, %v5298_v20  ;;  %v1706_v20 = vlaneseq }
 0x2d8   : > { %v5303_v36 = vsel %vm1968_vm2, %v1963_v30, 0  ;;  %v5306_v37 = vsel %vm1968_vm2, %v1964_v31, 0  ;;  %v3901_v38 = vpop.f32.mrb[23].mxu0  ;;  %v3909_v41 = vpop.f32.mrb[23].mxu1  ;;  %v1697_v34 = vmul.f32 %v1263_v42, %v5286_v11  ;;  %v1962_v11 = vpack.c.bf16 %v5300_v21, %v5300_v21 }
 0x2d9   : > { %v1707_v21 = vshrl.u32 %v1706_v20, 7 }
 0x35b   : > { %v1335_v44 = vpop.f32.mrb[24].mxu0  ;;  %v1390_v45 = vpop.f32.mrb[24].mxu1 }
 0x35c   : > { %v1510_v48 = vmul.f32 %v1335_v44, %v1264_v43  ;;  %v1511_v49 = vmul.f32 %v1390_v45, %v1264_v43  ;;  %v3916_v50 = vpop.f32.mrb[25].mxu0  ;;  %v3924_v51 = vpop.f32.mrb[25].mxu1 }
 0x35d   : > { %v1338_v52 = vpop.f32.mrb[26].mxu0  ;;  %v1393_v55 = vpop.f32.mrb[26].mxu1 }
 0x35e   : > { %v1514_v56 = vadd.f32 %v1510_v48, %v1506_v46  ;;  %v1515_v57 = vadd.f32 %v1511_v49, %v1507_v47  ;;  %v3917_v58 = vpop.f32.mrb[27].mxu0  ;;  %v3925_v59 = vpop.f32.mrb[27].mxu1 }
 0x35f   : > { %v2016_v58 = vsel %vm1968_vm2, %v1962_v11, 0  ;;  %v1709_v59 = vand.u32 127, %v1706_v20 }
 0x360   : > { %v1712_v63 = vpack.c.bf16 %v1514_v56, %v1514_v56  ;;  %v1713_v0 = vpack.c.bf16 %v1515_v57, %v1515_v57  ;;  %v1970_v57 = vsel %vm1968_vm2, %v1961_v10, 0 }
 0x361   : > { %vm1710_vm3 = vcmp.le.s32.totalorder %v1709_v59, %v1707_v21 }
 0x36b   : > { %v1445_v60 = vpop.f32.mrb[28].mxu0  ;;  %v1500_v61 = vpop.f32.mrb[28].mxu1 }
 0x36c   : > { %v1512_v2 = vmul.f32 %v1445_v60, %v1264_v43  ;;  %v1513_v39 = vmul.f32 %v1500_v61, %v1264_v43  ;;  %v3932_v3 = vpop.f32.mrb[29].mxu0  ;;  %v3940_v40 = vpop.f32.mrb[29].mxu1 }
 0x36d   : > { %v1448_v5 = vpop.f32.mrb[30].mxu0  ;;  %v1503_v6 = vpop.f32.mrb[30].mxu1 }
 0x36e   : > { %v1516_v7 = vadd.f32 %v1512_v2, %v1508_v62  ;;  %v1517_v8 = vadd.f32 %v1513_v39, %v1509_v1  ;;  %v3933_v9 = vpop.f32.mrb[31].mxu0  ;;  %v3941_v12 = vpop.f32.mrb[31].mxu1  ;;  %v4747_v62 = vmov -1e+09  }
 0x36f   : > { %v1711_v1 = vsel %vm1710_vm3, 0.0, %v4747_v62  ;;  %v4222_v62 = vld [vmem:[#allocation10 + $0x10] sm:$0xff]  }
 0x370   : > { %v1714_v42 = vpack.c.bf16 %v1516_v7, %v1516_v7 }
 0x37b   : > { %v1559_v13 = vpop.f32.mrb[32].mxu0  ;;  %v1602_v14 = vpop.f32.mrb[32].mxu1 }
 0x37c   : > { %v1698_v17 = vmul.f32 %v1559_v13, %v1264_v43  ;;  %v1699_v53 = vmul.f32 %v1602_v14, %v1264_v43  ;;  %v3948_v18 = vpop.f32.mrb[33].mxu0  ;;  %v3956_v54 = vpop.f32.mrb[33].mxu1 }
 0x37d   : > { %v1562_v19 = vpop.f32.mrb[34].mxu0  ;;  %v1605_v22 = vpop.f32.mrb[34].mxu1 }
 0x37e   : > { %v1702_v23 = vadd.f32 %v1698_v17, %v1694_v15  ;;  %v1703_v24 = vadd.f32 %v1699_v53, %v1695_v16  ;;  %v3949_v25 = vpop.f32.mrb[35].mxu0  ;;  %v3957_v26 = vpop.f32.mrb[35].mxu1 }
 0x380   : > { %v1716_v27 = vpack.c.bf16 %v1702_v23, %v1702_v23  ;;  %v1717_v28 = vpack.c.bf16 %v1703_v24, %v1703_v24 }
 0x382   : > { %v1724_v29 = vsel %vm1297_vm1, %v1716_v27, 0  ;;  %v1770_v30 = vsel %vm1297_vm1, %v1717_v28, 0 }
 0x383   : > { %3975 = vmatpush3.bf16.xpose.msra.mxu0 %v1724_v29  ;;  %3981 = vmatpush3.bf16.xpose.msra.mxu1 %v1770_v30 }
 0x384   : > { %3986 = vmatprep.subr.bf16.mxu0 %v4745_v4  ;;  %3992 = vmatprep.subr.bf16.mxu1 %v4745_v4 }
 0x38a   : > { %3977 = vmatmul.mubr.msk.bf16.vlgmr.msra.gmra.mrb[40].mxu0 %vm1297_vm1, %v1712_v63  ;;  %3983 = vmatmul.mubr.msk.bf16.vlgmr.msra.gmra.mrb[40].mxu1 %vm1297_vm1, %v1713_v0 }
 0x38b   : > { %v1645_v31 = vpop.f32.mrb[36].mxu0  ;;  %v1688_v32 = vpop.f32.mrb[36].mxu1  ;;  %3988 = vmatprep.mubr.msk.bf16.mxu0 %vm4746_vm0, %v4745_v4  ;;  %3994 = vmatprep.mubr.msk.bf16.mxu1 %vm4746_vm0, %v4745_v4 }
 0x38c   : > { %v1700_v35 = vmul.f32 %v1645_v31, %v1264_v43  ;;  %v1701_v38 = vmul.f32 %v1688_v32, %v1264_v43  ;;  %v3964_v41 = vpop.f32.mrb[37].mxu0  ;;  %v3972_v44 = vpop.f32.mrb[37].mxu1  ;;  %v1715_v43 = vpack.c.bf16 %v1517_v8, %v1517_v8 }
 0x38d   : > { %v1648_v45 = vpop.f32.mrb[38].mxu0  ;;  %v1691_v46 = vpop.f32.mrb[38].mxu1 }
 0x38e   : > { %v1704_v47 = vadd.f32 %v1700_v35, %v1696_v33  ;;  %v1705_v48 = vadd.f32 %v1701_v38, %v1697_v34  ;;  %v3965_v49 = vpop.f32.mrb[39].mxu0  ;;  %v3973_v50 = vpop.f32.mrb[39].mxu1 }
 0x390   : > { %v1718_v51 = vpack.c.bf16 %v1704_v47, %v1704_v47  ;;  %v1719_v52 = vpack.c.bf16 %v1705_v48, %v1705_v48 }
 0x392   : > { %v1816_v55 = vsel %vm1297_vm1, %v1718_v51, 0  ;;  %v1862_v56 = vsel %vm1297_vm1, %v1719_v52, 0 }
 0x393   : > { %3987 = vmatpush3.bf16.xpose.msra.mxu0 %v1816_v55  ;;  %3993 = vmatpush3.bf16.xpose.msra.mxu1 %v1862_v56 }
 0x394   : > { %3998 = vmatprep.subr.bf16.mxu0 %v4745_v4  ;;  %4004 = vmatprep.subr.bf16.mxu1 %v4745_v4 }
 0x39a   : > { %3989 = vmatmul.mubr.msk.bf16.vlgmr.msra.gmra.mrb[44].mxu0 %vm1297_vm1, %v1714_v42  ;;  %3995 = vmatmul.mubr.msk.bf16.vlgmr.msra.gmra.mrb[44].mxu1 %vm1297_vm1, %v1715_v43 }
 0x39b   : > { %3999 = vmatpush3.bf16.msra.mxu0 %v1970_v57  ;;  %4005 = vmatpush3.bf16.msra.mxu1 %v2016_v58 }
 0x39c   : > { %4000 = vmatprep.mubr.msk.bf16.mxu0 %vm4746_vm0, %v4745_v4  ;;  %4006 = vmatprep.mubr.msk.bf16.mxu1 %vm4746_vm0, %v4745_v4 }
 0x39d   : > { %4010 = vmatprep.subr.bf16.mxu0 %v4745_v4  ;;  %4016 = vmatprep.subr.bf16.mxu1 %v4745_v4 }
 0x45d   : > { %v1760_v60 = vpop.f32.mrb[40].mxu0  ;;  %v1806_v61 = vpop.f32.mrb[40].mxu1 }
 0x45e   : > { %v1904_v2 = vmul.f32 0.17677669, %v1760_v60  ;;  %v1905_v39 = vmul.f32 0.17677669, %v1806_v61  ;;  %v3978_v3 = vpop.f32.mrb[41].mxu0  ;;  %v3984_v40 = vpop.f32.mrb[41].mxu1 }
 0x45f   : > { %v1763_v5 = vpop.f32.mrb[42].mxu0  ;;  %v1809_v6 = vpop.f32.mrb[42].mxu1  ;;  %v4224_v3 = vld [vmem:[#allocation10 + $0x18] sm:$0xff]  }
 0x460   : > { %v3979_v7 = vpop.f32.mrb[43].mxu0  ;;  %v3985_v8 = vpop.f32.mrb[43].mxu1  ;;  %v1909_v9 = vadd.f32 %v1905_v39, %v1711_v1  ;;  %v1908_v12 = vadd.f32 %v1904_v2, %v1711_v1  ;;  %v4221_v2 = vld [vmem:[#allocation10] sm:$0xff]   ;;  %v4226_v5 = vld [vmem:[#allocation10 + $0x30] sm:$0xff]  }
 0x462   : > { %v1916_v13 = vsel %vm1912_vm4, %v1909_v9, -inf  ;;  %v1913_v14 = vsel %vm1912_vm4, %v1908_v12, -inf }
 0x463   : > { %1917 = vmax.xlane.f32.xlu1 %v1916_v13  ;;  %1914 = vmax.xlane.f32.xlu0 %v1913_v14 }
 0x46d   : > { %v1852_v15 = vpop.f32.mrb[44].mxu0  ;;  %v1898_v16 = vpop.f32.mrb[44].mxu1 }
 0x46e   : > { %v1906_v17 = vmul.f32 0.17677669, %v1852_v15  ;;  %v1907_v53 = vmul.f32 0.17677669, %v1898_v16  ;;  %v3990_v18 = vpop.f32.mrb[45].mxu0  ;;  %v3996_v54 = vpop.f32.mrb[45].mxu1 }
 0x46f   : > { %v1855_v19 = vpop.f32.mrb[46].mxu0  ;;  %v1901_v22 = vpop.f32.mrb[46].mxu1  ;;  %v4227_v18 = vld [vmem:[#allocation10 + $0x28] sm:$0xff]  }
 0x470   : > { %v3991_v23 = vpop.f32.mrb[47].mxu0  ;;  %v3997_v24 = vpop.f32.mrb[47].mxu1  ;;  %v1911_v25 = vadd.f32 %v1907_v53, %v1711_v1  ;;  %v1910_v26 = vadd.f32 %v1906_v17, %v1711_v1  ;;  %v4228_v53 = vld [vmem:[#allocation10 + $0x38] sm:$0xff]  }
 0x472   : > { %v1922_v27 = vsel %vm1912_vm4, %v1911_v25, -inf  ;;  %v1919_v28 = vsel %vm1912_vm4, %v1910_v26, -inf }
 0x473   : > { %1923 = vmax.xlane.f32.xlu0 %v1922_v27  ;;  %1920 = vmax.xlane.f32.xlu1 %v1919_v28 }
 0x4f0   : > { %v1918_v29 = vpop.xlane.xlu1 %1917  ;;  %v1915_v30 = vpop.xlane.xlu0 %1914 }
 0x4f1   : > { %v1926_v63 = vsub.f32 %v1909_v9, %v1918_v29  ;;  %v1925_v0 = vsub.f32 %v1908_v12, %v1915_v30  ;;  %v4225_v9 = vld [vmem:[#allocation10 + $0x20] sm:$0xff]  }
 0x4f2   : > { %v4229_v30 = vld [vmem:[#allocation11] ss:$16 sps:$4 sm:$0xff]  }
 0x4f3   : > { %v1931_v31 = vmul.f32 1.442695, %v1926_v63  ;;  %v1929_v32 = vmul.f32 1.442695, %v1925_v0  ;;  %v4231_v63 = vld [vmem:[#allocation11 + $0x4] ss:$16 sps:$4 sm:$0xff]  }
 0x4f4   : > { %v4232_v0 = vld [vmem:[#allocation11 + $0x8] ss:$16 sps:$4 sm:$0xff]  }
 0x4f5   : > { %4359 = vpow2.f32 %v1931_v31  ;;  %v4237_v31 = vld [vmem:[#allocation11 + $0x24] ss:$16 sps:$4 sm:$0xff]  }
 0x4f6   : > { %4361 = vpow2.f32 %v1929_v32  ;;  %v4240_v32 = vld [vmem:[#allocation11 + $0x2c] ss:$16 sps:$4 sm:$0xff]  }
 0x4ff   : > { %v4360_v33 = vpop.eup %4359 }
 0x500   : > { %v4362_v34 = vpop.eup %4361  ;;  %v1924_v35 = vpop.xlane.xlu0 %1923  ;;  %v1940_v41 = vsel %vm1912_vm4, %v4360_v33, 0.0 }
 0x501   : > { %v1921_v38 = vpop.xlane.xlu1 %1920  ;;  %v1928_v44 = vsub.f32 %v1911_v25, %v1924_v35  ;;  %1941 = vadd.xlane.f32.xlu0 %v1940_v41  ;;  %v1937_v46 = vsel %vm1912_vm4, %v4362_v34, 0.0  ;;  %v4243_v35 = vld [vmem:[#allocation11 + $0x44] ss:$16 sps:$4 sm:$0xff]   ;;  %v4241_v41 = vld [vmem:[#allocation11 + $0x40] ss:$16 sps:$4 sm:$0xff]  }
 0x502   : > { %v1927_v45 = vsub.f32 %v1910_v26, %v1921_v38  ;;  %1938 = vadd.xlane.f32.xlu1 %v1937_v46  ;;  %v4246_v38 = vld [vmem:[#allocation11 + $0x4c] ss:$16 sps:$4 sm:$0xff]  }
 0x503   : > { %v1935_v47 = vmul.f32 1.442695, %v1928_v44  ;;  %v4244_v44 = vld [vmem:[#allocation11 + $0x48] ss:$16 sps:$4 sm:$0xff]  }
 0x504   : > { %v1933_v48 = vmul.f32 1.442695, %v1927_v45 }
 0x505   : > { %4363 = vpow2.f32 %v1935_v47 }
 0x506   : > { %4365 = vpow2.f32 %v1933_v48 }
 0x50f   : > { %v4364_v49 = vpop.eup %4363 }
 0x510   : > { %v4366_v50 = vpop.eup %4365  ;;  %v1946_v51 = vsel %vm1912_vm4, %v4364_v49, 0.0 }
 0x511   : > { %1947 = vadd.xlane.f32.xlu0 %v1946_v51  ;;  %v1943_v52 = vsel %vm1912_vm4, %v4366_v50, 0.0 }
 0x512   : > { %1944 = vadd.xlane.f32.xlu1 %v1943_v52 }
 0x58e   : > { %v1942_v55 = vpop.xlane.xlu0 %1941 }
 0x58f   : > { %4367 = vrcp.f32 %v1942_v55  ;;  %v1939_v56 = vpop.xlane.xlu1 %1938 }
 0x590   : > { %4369 = vrcp.f32 %v1939_v56 }
 0x599   : > { %v4368_v10 = vpop.eup %4367 }
 0x59a   : > { %v4370_v11 = vpop.eup %4369  ;;  %v1954_v42 = vmul.f32 %v4368_v10, %v4360_v33  ;;  %v4235_v33 = vld [vmem:[#allocation11 + $0x20] ss:$16 sps:$4 sm:$0xff]  }
 0x59b   : > { %v1953_v43 = vmul.f32 %v4370_v11, %v4362_v34  ;;  %v4238_v34 = vld [vmem:[#allocation11 + $0x28] ss:$16 sps:$4 sm:$0xff]  }
 0x59c   : > { %v1958_v57 = vpack.c.bf16 %v1954_v42, %v1954_v42 }
 0x59d   : > { %v1957_v58 = vpack.c.bf16 %v1953_v43, %v1953_v43 }
 0x59e   : > { %4007 = vmatmul.mubr.msk.bf16.vlgmr.msra.gmra.mrb[48].mxu1 %vm1912_vm4, %v1958_v57  ;;  %v1948_v20 = vpop.xlane.xlu0 %1947 }
 0x59f   : > { %4017 = vmatpush3.bf16.msra.mxu1 %v5306_v37  ;;  %4371 = vrcp.f32 %v1948_v20  ;;  %4001 = vmatmul.mubr.msk.bf16.vlgmr.msra.gmra.mrb[48].mxu0 %vm1912_vm4, %v1957_v58  ;;  %v1945_v21 = vpop.xlane.xlu1 %1944 }
 0x5a0   : > { %4011 = vmatpush3.bf16.msra.mxu0 %v5303_v36  ;;  %4373 = vrcp.f32 %v1945_v21  ;;  %4012 = vmatprep.mubr.msk.bf16.mxu0 %vm4746_vm0, %v4745_v4  ;;  %v4223_v36 = vld [vmem:[#allocation10 + $0x8] sm:$0xff]  }
 0x5a1   : > { %4018 = vmatprep.mubr.msk.bf16.mxu1 %vm4746_vm0, %v4745_v4  ;;  %4022 = vmatprep.subr.bf16.mxu0 %v4745_v4 }
 0x5a2   : > { %4030 = vmatprep.subr.bf16.mxu1 %v4745_v4 }
 0x5a9   : > { %v4372_v59 = vpop.eup %4371 }
 0x5aa   : > { %v4374_v60 = vpop.eup %4373  ;;  %v1956_v37 = vmul.f32 %v4372_v59, %v4364_v49 }
 0x5ab   : > { %v1955_v61 = vmul.f32 %v4374_v60, %v4366_v50  ;;  %v4393_v60 = vld [vmem:[%s5132_s17] sm:$0xff]  ;;  %s3679_s17 = sshll.u32 %s4841_s14, 7  ;;  %s4749_s14 = smov [#allocation17]  }
 0x5ac   : > { %v1960_v1 = vpack.c.bf16 %v1956_v37, %v1956_v37  ;;  %s5410_s18 = scalar_lea.hbm %s5509_s19, %s3679_s17  ;;  %s4652_s13 = sshll.u32 %s4749_s14, 4  ;;  %s4653_s13 = int_to_ptr.vmem [resolvable:$false] %s4652_s13 }
 0x5ad   : > { %v1959_v39 = vpack.c.bf16 %v1955_v61, %v1955_v61  ;;  %s4654_s10 = scalar_lea.vmem %s4653_s13, 256  ;;  %p4655_p2 = scmp.lt.s32.totalorder %s5412_s30, %s4653_s13 }
 0x5ae   : > { %4019 = vmatmul.mubr.msk.bf16.vlgmr.msra.gmra.mrb[52].mxu1 %vm1912_vm4, %v1960_v1  ;;  %v4252_v1 = vld [vmem:[#allocation11 + $0x6c] ss:$16 sps:$4 sm:$0xff]   ;;  %p4656_p0 = scmp.lt.s32.totalorder %s4654_s10, %s4648_s8 }
 0x5af   : > { %4013 = vmatmul.mubr.msk.bf16.vlgmr.msra.gmra.mrb[52].mxu0 %vm1912_vm4, %v1959_v39  ;;  %4031 = vmatpush3.bf16.msra.mxu1 %v4222_v62  ;;  %v4249_v62 = vld [vmem:[#allocation11 + $0x64] ss:$16 sps:$4 sm:$0xff]   ;;  %v4250_v39 = vld [vmem:[#allocation11 + $0x68] ss:$16 sps:$4 sm:$0xff]  }
 0x5b0   : > { %4023 = vmatpush3.bf16.msra.mxu0 %v4221_v2  ;;  %4032 = vmatprep.subr.bf16.mxu1 %v4745_v4  ;;  %v4247_v2 = vld [vmem:[#allocation11 + $0x60] ss:$16 sps:$4 sm:$0xff]   ;;  %p4657_p4 = por %p4656_p0, %p4655_p2 }
 0x5b1   : > { %4024 = vmatprep.subr.bf16.mxu0 %v4745_v4  ;;  %4026 = vmatprep.mubr.msk.bf16.mxu0 %vm4746_vm0, %v4745_v4 }
 0x5b2   : > { %4034 = vmatprep.mubr.msk.bf16.mxu1 %vm4746_vm0, %v4745_v4  ;;  %p4658_p10 = pnand %p4657_p4, %p4651_p3 }
 0x5b3   : > { %4033 = vmatpush3.bf16.msra.mxu1 %v4224_v3  ;;  %v4258_v3 = vld [vmem:[#allocation11 + $0x8c] ss:$16 sps:$4 sm:$0xff]  }
 0x5b4   : > { %4025 = vmatpush3.bf16.msra.mxu0 %v4223_v36  ;;  %4046 = vmatprep.subr.bf16.mxu1 %v4745_v4  ;;  %v4255_v36 = vld [vmem:[#allocation11 + $0x84] ss:$16 sps:$4 sm:$0xff]  }
 0x5b5   : > { %4038 = vmatprep.subr.bf16.mxu0 %v4745_v4 }
 0x671   : > { %v2052_v40 = vpop.f32.mrb[48].mxu1 }
 0x672   : > { %v2006_v6 = vpop.f32.mrb[48].mxu0  ;;  %v2151_v7 = vpack.c.bf16 %v2052_v40, %v2052_v40  ;;  %v4008_v8 = vpop.f32.mrb[49].mxu1  ;;  %v4253_v40 = vld [vmem:[#allocation11 + $0x80] ss:$16 sps:$4 sm:$0xff]  }
 0x673   : > { %v2150_v12 = vpack.c.bf16 %v2006_v6, %v2006_v6  ;;  %v4002_v13 = vpop.f32.mrb[49].mxu0  ;;  %v2055_v14 = vpop.f32.mrb[50].mxu1  ;;  %v4261_v6 = vld [vmem:[#allocation11 + $0xa4] ss:$16 sps:$4 sm:$0xff]   ;;  %v4259_v8 = vld [vmem:[#allocation11 + $0xa0] ss:$16 sps:$4 sm:$0xff]  }
 0x674   : > { %v2009_v15 = vpop.f32.mrb[50].mxu0  ;;  %v4009_v16 = vpop.f32.mrb[51].mxu1  ;;  %4035 = vmatmul.mubr.msk.bf16.vlgmr.msra.gmra.mrb[56].mxu1 %vm1297_vm1, %v2151_v7  ;;  %v4264_v7 = vld [vmem:[#allocation11 + $0xac] ss:$16 sps:$4 sm:$0xff]   ;;  %v4748_v14 = vmov 0  }
 0x675   : > { %v4003_v17 = vpop.f32.mrb[51].mxu0  ;;  %4027 = vmatmul.mubr.msk.bf16.vlgmr.msra.gmra.mrb[56].mxu0 %vm1297_vm1, %v2150_v12  ;;  %4047 = vmatpush3.bf16.msra.mxu1 %v4226_v5  ;;  %v4256_v5 = vld [vmem:[#allocation11 + $0x88] ss:$16 sps:$4 sm:$0xff]   ;;  %v4267_v12 = vld [vmem:[#allocation11 + $0xc4] ss:$16 sps:$4 sm:$0xff]  }
 0x676   : > { %4039 = vmatpush3.bf16.msra.mxu0 %v4225_v9  ;;  %4048 = vmatprep.subr.bf16.mxu1 %v4745_v4  ;;  %v4262_v9 = vld [vmem:[#allocation11 + $0xa8] ss:$16 sps:$4 sm:$0xff]   ;;  %v4270_v13 = vld [vmem:[#allocation11 + $0xcc] ss:$16 sps:$4 sm:$0xff]   ;;  %v4265_v15 = vld [vmem:[#allocation11 + $0xc0] ss:$16 sps:$4 sm:$0xff]  }
 0x677   : > { %4040 = vmatprep.subr.bf16.mxu0 %v4745_v4  ;;  %4042 = vmatprep.mubr.msk.bf16.mxu0 %vm4746_vm0, %v4745_v4  ;;  %v4268_v16 = vld [vmem:[#allocation11 + $0xc8] ss:$16 sps:$4 sm:$0xff]   ;;  %v4273_v17 = vld [vmem:[#allocation11 + $0xe4] ss:$16 sps:$4 sm:$0xff]  }
 0x678   : > { %4050 = vmatprep.mubr.msk.bf16.mxu1 %vm4746_vm0, %v4745_v4  ;;  %v4234_v4 = vld [vmem:[#allocation11 + $0xc] ss:$16 sps:$4 sm:$0xff]  }
 0x679   : > { %4049 = vmatpush3.bf16.msra.mxu1 %v4228_v53  ;;  %v4276_v53 = vld [vmem:[#allocation11 + $0xec] ss:$16 sps:$4 sm:$0xff]  }
 0x67a   : > { %4041 = vmatpush3.bf16.msra.mxu0 %v4227_v18  ;;  %2643 = vmatprep.subr.bf16.mxu1 %v4234_v4  ;;  %v4271_v18 = vld [vmem:[#allocation11 + $0xe0] ss:$16 sps:$4 sm:$0xff]   ;;  %v4285_v4 = vld [vmem:[#allocation14 + $0x24] ss:$16 sps:$4 sm:$0xff]  }
 0x67b   : > { %2602 = vmatprep.subr.bf16.mxu0 %v4231_v63  ;;  %v4280_v63 = vld [vmem:[#allocation14 + $0x8] ss:$16 sps:$4 sm:$0xff]  }
 0x681   : > { %v2144_v54 = vpop.f32.mrb[52].mxu1 }
 0x682   : > { %v2098_v19 = vpop.f32.mrb[52].mxu0  ;;  %v2153_v22 = vpack.c.bf16 %v2144_v54, %v2144_v54  ;;  %v4020_v23 = vpop.f32.mrb[53].mxu1  ;;  %v4274_v54 = vld [vmem:[#allocation11 + $0xe8] ss:$16 sps:$4 sm:$0xff]  }
 0x683   : > { %v2152_v24 = vpack.c.bf16 %v2098_v19, %v2098_v19  ;;  %v4014_v25 = vpop.f32.mrb[53].mxu0  ;;  %v2147_v26 = vpop.f32.mrb[54].mxu1  ;;  %v4279_v19 = vld [vmem:[#allocation14 + $0x4] ss:$16 sps:$4 sm:$0xff]  }
 0x684   : > { %v2101_v27 = vpop.f32.mrb[54].mxu0  ;;  %v4021_v28 = vpop.f32.mrb[55].mxu1  ;;  %4051 = vmatmul.mubr.msk.bf16.vlgmr.msra.gmra.mrb[60].mxu1 %vm1297_vm1, %v2153_v22  ;;  %v4282_v22 = vld [vmem:[#allocation14 + $0xc] ss:$16 sps:$4 sm:$0xff]  }
 0x685   : > { %v4015_v29 = vpop.f32.mrb[55].mxu0  ;;  %4043 = vmatmul.mubr.msk.bf16.vlgmr.msra.gmra.mrb[60].mxu0 %vm1297_vm1, %v2152_v24  ;;  %2644 = vmatpush1.bf16.msra.mxu1 %v4232_v0  ;;  %v3577_v27 = vld [vmem:[%s5508_s3] ss:$0 sm:$0xff] }
 0x686   : > { %2603 = vmatpush1.bf16.msra.mxu0 %v4229_v30  ;;  %2645 = vmatprep.subr.bf16.mxu1 %v4240_v32  ;;  %v4277_v30 = vld [vmem:[#allocation14] ss:$16 sps:$4 sm:$0xff]  }
 0x687   : > { %2604 = vmatprep.subr.bf16.mxu0 %v4237_v31  ;;  %2634 = vmatprep.mubr.bf16.mxu0 %v4748_v14  ;;  %v4288_v31 = vld [vmem:[#allocation14 + $0x2c] ss:$16 sps:$4 sm:$0xff]   ;;  %v4283_v32 = vld [vmem:[#allocation14 + $0x20] ss:$16 sps:$4 sm:$0xff]  }
 0x688   : > { %2675 = vmatprep.mubr.bf16.mxu1 %v4748_v14 }
 0x689   : > { %2646 = vmatpush1.bf16.msra.mxu1 %v4238_v34  ;;  %v4291_v34 = vld [vmem:[#allocation14 + $0x44] ss:$16 sps:$4 sm:$0xff]  }
 0x68a   : > { %2605 = vmatpush1.bf16.msra.mxu0 %v4235_v33  ;;  %2647 = vmatprep.subr.bf16.mxu1 %v4246_v38  ;;  %v4286_v33 = vld [vmem:[#allocation14 + $0x28] ss:$16 sps:$4 sm:$0xff]   ;;  %v4289_v38 = vld [vmem:[#allocation14 + $0x40] ss:$16 sps:$4 sm:$0xff]  }
 0x68b   : > { %2606 = vmatprep.subr.bf16.mxu0 %v4243_v35  ;;  %v4294_v35 = vld [vmem:[#allocation14 + $0x4c] ss:$16 sps:$4 sm:$0xff]  }
 0x68d   : > { %2648 = vmatpush1.bf16.msra.mxu1 %v4244_v44  ;;  %v4297_v44 = vld [vmem:[#allocation14 + $0x64] ss:$16 sps:$4 sm:$0xff]  }
 0x68e   : > { %2607 = vmatpush1.bf16.msra.mxu0 %v4241_v41  ;;  %2649 = vmatprep.subr.bf16.mxu1 %v4252_v1  ;;  %v4292_v41 = vld [vmem:[#allocation14 + $0x48] ss:$16 sps:$4 sm:$0xff]   ;;  %v4328_v1 = vld [vmem:[#allocation13 + $0x80] sm:$0xff]  }
 0x68f   : > { %2608 = vmatprep.subr.bf16.mxu0 %v4249_v62  ;;  %v4327_v62 = vld [vmem:[#allocation13] sm:$0xff]  }
 0x691   : > { %2650 = vmatpush1.bf16.msra.mxu1 %v4250_v39  ;;  %v4330_v39 = vld [vmem:[#allocation13 + $0xc8] sm:$0xff]  }
 0x692   : > { %2609 = vmatpush1.bf16.msra.mxu0 %v4247_v2  ;;  %2651 = vmatprep.subr.bf16.mxu1 %v4258_v3  ;;  %v4329_v2 = vld [vmem:[#allocation13 + $0x48] sm:$0xff]  }
 0x693   : > { %2610 = vmatprep.subr.bf16.mxu0 %v4255_v36  ;;  %v4331_v36 = vld [vmem:[#allocation13 + $0x8] sm:$0xff]  }
 0x694   : > { %v4332_v3 = vld [vmem:[#allocation13 + $0x88] sm:$0xff]  }
 0x695   : > { %2652 = vmatpush1.bf16.msra.mxu1 %v4256_v5  ;;  %v4334_v5 = vld [vmem:[#allocation13 + $0xd0] sm:$0xff]  }
 0x696   : > { %2611 = vmatpush1.bf16.msra.mxu0 %v4253_v40  ;;  %2653 = vmatprep.subr.bf16.mxu1 %v4264_v7  ;;  %v4333_v40 = vld [vmem:[#allocation13 + $0x50] sm:$0xff]  }
 0x697   : > { %2612 = vmatprep.subr.bf16.mxu0 %v4261_v6  ;;  %v4335_v6 = vld [vmem:[#allocation13 + $0x10] sm:$0xff]  }
 0x698   : > { %v4336_v7 = vld [vmem:[#allocation13 + $0x90] sm:$0xff]  }
 0x699   : > { %2654 = vmatpush1.bf16.msra.mxu1 %v4262_v9  ;;  %v4338_v9 = vld [vmem:[#allocation13 + $0xd8] sm:$0xff]  }
 0x69a   : > { %2613 = vmatpush1.bf16.msra.mxu0 %v4259_v8  ;;  %2655 = vmatprep.subr.bf16.mxu1 %v4270_v13  ;;  %v4337_v8 = vld [vmem:[#allocation13 + $0x58] sm:$0xff]  }
 0x69b   : > { %2614 = vmatprep.subr.bf16.mxu0 %v4267_v12  ;;  %v4339_v12 = vld [vmem:[#allocation13 + $0x18] sm:$0xff]  }
 0x69c   : > { %v4340_v13 = vld [vmem:[#allocation13 + $0x98] sm:$0xff]  }
 0x69d   : > { %2656 = vmatpush1.bf16.msra.mxu1 %v4268_v16  ;;  %v4343_v16 = vld [vmem:[#allocation13 + $0x20] sm:$0xff]  }
 0x69e   : > { %2615 = vmatpush1.bf16.msra.mxu0 %v4265_v15  ;;  %2657 = vmatprep.subr.bf16.mxu1 %v4276_v53  ;;  %v4342_v15 = vld [vmem:[#allocation13 + $0xe0] sm:$0xff]   ;;  %v4345_v53 = vld [vmem:[#allocation13 + $0x68] sm:$0xff]  }
 0x69f   : > { %2616 = vmatprep.subr.bf16.mxu0 %v4273_v17  ;;  %v4344_v17 = vld [vmem:[#allocation13 + $0xa0] sm:$0xff]  }
 0x6a1   : > { %2658 = vmatpush1.bf16.msra.mxu1 %v4274_v54  ;;  %v4347_v54 = vld [vmem:[#allocation13 + $0x28] sm:$0xff]  }
 0x6a2   : > { %2617 = vmatpush1.bf16.msra.mxu0 %v4271_v18  ;;  %2917 = vmatprep.subr.bf16.mxu1 %v4282_v22  ;;  %v4346_v18 = vld [vmem:[#allocation13 + $0xe8] sm:$0xff]   ;;  %v4349_v22 = vld [vmem:[#allocation13 + $0x70] sm:$0xff]  }
 0x6a3   : > { %2876 = vmatprep.subr.bf16.mxu0 %v4279_v19  ;;  %v4348_v19 = vld [vmem:[#allocation13 + $0xa8] sm:$0xff]  }
 0x747   : > { %v2274_v45 = vpop.f32.mrb[56].mxu1 }
 0x748   : > { %v2219_v46 = vpop.f32.mrb[56].mxu0  ;;  %v4036_v47 = vpop.f32.mrb[57].mxu1 }
 0x749   : > { %v2390_v48 = vadd.f32 %v2274_v45, %v2219_v46  ;;  %v4028_v49 = vpop.f32.mrb[57].mxu0  ;;  %v2277_v50 = vpop.f32.mrb[58].mxu1  ;;  %v4300_v45 = vld [vmem:[#allocation14 + $0x6c] ss:$16 sps:$4 sm:$0xff]   ;;  %v4295_v46 = vld [vmem:[#allocation14 + $0x60] ss:$16 sps:$4 sm:$0xff]  }
 0x74a   : > { %v2222_v51 = vpop.f32.mrb[58].mxu0  ;;  %v4037_v52 = vpop.f32.mrb[59].mxu1  ;;  %v4298_v47 = vld [vmem:[#allocation14 + $0x68] ss:$16 sps:$4 sm:$0xff]   ;;  %v4306_v49 = vld [vmem:[#allocation14 + $0x8c] ss:$16 sps:$4 sm:$0xff]  }
 0x74b   : > { %v4029_v55 = vpop.f32.mrb[59].mxu0  ;;  %v4301_v50 = vld [vmem:[#allocation14 + $0x80] ss:$16 sps:$4 sm:$0xff]   ;;  %v4304_v51 = vld [vmem:[#allocation14 + $0x88] ss:$16 sps:$4 sm:$0xff]  }
 0x74c   : > { %v4309_v52 = vld [vmem:[#allocation14 + $0xa4] ss:$16 sps:$4 sm:$0xff]   ;;  %v4312_v55 = vld [vmem:[#allocation14 + $0xac] ss:$16 sps:$4 sm:$0xff]  }
 0x757   : > { %v2384_v56 = vpop.f32.mrb[60].mxu1 }
 0x758   : > { %v2329_v10 = vpop.f32.mrb[60].mxu0  ;;  %v4052_v11 = vpop.f32.mrb[61].mxu1 }
 0x759   : > { %v2391_v42 = vadd.f32 %v2390_v48, %v2329_v10  ;;  %v4044_v43 = vpop.f32.mrb[61].mxu0  ;;  %v2387_v57 = vpop.f32.mrb[62].mxu1  ;;  %v4303_v48 = vld [vmem:[#allocation14 + $0x84] ss:$16 sps:$4 sm:$0xff]   ;;  %v4310_v10 = vld [vmem:[#allocation14 + $0xa8] ss:$16 sps:$4 sm:$0xff]  }
 0x75a   : > { %v2332_v58 = vpop.f32.mrb[62].mxu0  ;;  %v4053_v20 = vpop.f32.mrb[63].mxu1  ;;  %v4315_v11 = vld [vmem:[#allocation14 + $0xc4] ss:$16 sps:$4 sm:$0xff]   ;;  %v4313_v43 = vld [vmem:[#allocation14 + $0xc0] ss:$16 sps:$4 sm:$0xff]  }
 0x75b   : > { %v2392_v21 = vadd.f32 %v2391_v42, %v2384_v56  ;;  %v4045_v59 = vpop.f32.mrb[63].mxu0  ;;  %v4307_v56 = vld [vmem:[#allocation14 + $0xa0] ss:$16 sps:$4 sm:$0xff]   ;;  %v4318_v42 = vld [vmem:[#allocation14 + $0xcc] ss:$16 sps:$4 sm:$0xff]  }
 0x75c   : > { %v4316_v57 = vld [vmem:[#allocation14 + $0xc8] ss:$16 sps:$4 sm:$0xff]   ;;  %v4321_v58 = vld [vmem:[#allocation14 + $0xe4] ss:$16 sps:$4 sm:$0xff]   ;;  %v4324_v20 = vld [vmem:[#allocation14 + $0xec] ss:$16 sps:$4 sm:$0xff]  }
 0x75d   : > { %v5389_v37 = vadd.f32 %v4393_v60, %v2392_v21  ;;  %v4319_v21 = vld [vmem:[#allocation14 + $0xe0] ss:$16 sps:$4 sm:$0xff]   ;;  %v4322_v59 = vld [vmem:[#allocation14 + $0xe8] ss:$16 sps:$4 sm:$0xff]  }
 0x75e   : > { %v4325_v60 = vld [vmem:[#allocation13 + $0x40] sm:$0xff]  }
 0x75f   : > { %v2395_v61 = vmul.f32 %v5389_v37, %v5389_v37 }
 0x761   : > { %2396 = vadd.xlane.f32.xlu1 %v2395_v61  ;;  %v4326_v61 = vld [vmem:[#allocation13 + $0xc0] sm:$0xff]  }
 0x7ee   : > { %v2397_v23 = vpop.xlane.xlu1 %2396 }
 0x7ef   : > { %v2398_v24 = vmul.f32 0.0078125, %v2397_v23  ;;  %v4350_v23 = vld [vmem:[#allocation13 + $0xf0] sm:$0xff]  }
 0x7f1   : > { %v2399_v25 = vadd.f32 1e-05, %v2398_v24  ;;  %v4351_v24 = vld [vmem:[#allocation13 + $0x30] sm:$0xff]  }
 0x7f3   : > { %4375 = vrsqrt.f32 %v2399_v25  ;;  %v4352_v25 = vld [vmem:[#allocation13 + $0xb0] sm:$0xff]  }
 0x7fd   : > { %v4376_v26 = vpop.eup %4375 }
 0x7fe   : > { %v2401_v28 = vmul.f32 %v4376_v26, %v5389_v37  ;;  %v4353_v26 = vld [vmem:[#allocation13 + $0x78] sm:$0xff]  }
 0x800   : > { %v2408_v29 = vmul.f32 %v3577_v27, %v2401_v28  ;;  %v4354_v27 = vld [vmem:[#allocation13 + $0xf8] sm:$0xff]  }
 0x801   : > { %v4355_v28 = vld [vmem:[#allocation13 + $0x38] sm:$0xff]  }
 0x802   : > { %v5397_v0 = vpack.c.bf16 %v2408_v29, %v2408_v29  ;;  %v4356_v29 = vld [vmem:[#allocation13 + $0xb8] sm:$0xff]  }
 0x804   : > { %2635 = vmatmul.mubr.bf16.vlgmr.msra.gmra.mrb[64].mxu0 %v5397_v0  ;;  %2676 = vmatmul.mubr.bf16.vlgmr.msra.gmra.mrb[64].mxu1 %v5397_v0 }
 0x805   : > { %2877 = vmatpush1.bf16.msra.mxu0 %v4277_v30  ;;  %2918 = vmatpush1.bf16.msra.mxu1 %v4280_v63 }
 0x806   : > { %2878 = vmatprep.subr.bf16.mxu0 %v4285_v4  ;;  %2919 = vmatprep.subr.bf16.mxu1 %v4288_v31 }
 0x807   : > { %2908 = vmatprep.mubr.bf16.mxu0 %v4748_v14  ;;  %2949 = vmatprep.mubr.bf16.mxu1 %v4748_v14  ;;  %v4341_v14 = vld [vmem:[#allocation13 + $0x60] sm:$0xff]  }
 0x809   : > { %2879 = vmatpush1.bf16.msra.mxu0 %v4283_v32  ;;  %2920 = vmatpush1.bf16.msra.mxu1 %v4286_v33 }
 0x80a   : > { %2880 = vmatprep.subr.bf16.mxu0 %v4291_v34  ;;  %2921 = vmatprep.subr.bf16.mxu1 %v4294_v35 }
 0x80d   : > { %2881 = vmatpush1.bf16.msra.mxu0 %v4289_v38  ;;  %2922 = vmatpush1.bf16.msra.mxu1 %v4292_v41 }
 0x80e   : > { %2882 = vmatprep.subr.bf16.mxu0 %v4297_v44  ;;  %2923 = vmatprep.subr.bf16.mxu1 %v4300_v45 }
 0x811   : > { %2883 = vmatpush1.bf16.msra.mxu0 %v4295_v46  ;;  %2924 = vmatpush1.bf16.msra.mxu1 %v4298_v47 }
 0x812   : > { %2884 = vmatprep.subr.bf16.mxu0 %v4303_v48  ;;  %2925 = vmatprep.subr.bf16.mxu1 %v4306_v49 }
 0x815   : > { %2885 = vmatpush1.bf16.msra.mxu0 %v4301_v50  ;;  %2926 = vmatpush1.bf16.msra.mxu1 %v4304_v51 }
 0x816   : > { %2886 = vmatprep.subr.bf16.mxu0 %v4309_v52  ;;  %2927 = vmatprep.subr.bf16.mxu1 %v4312_v55 }
 0x819   : > { %2887 = vmatpush1.bf16.msra.mxu0 %v4307_v56  ;;  %2928 = vmatpush1.bf16.msra.mxu1 %v4310_v10 }
 0x81a   : > { %2888 = vmatprep.subr.bf16.mxu0 %v4315_v11  ;;  %2929 = vmatprep.subr.bf16.mxu1 %v4318_v42 }
 0x81d   : > { %2889 = vmatpush1.bf16.msra.mxu0 %v4313_v43  ;;  %2930 = vmatpush1.bf16.msra.mxu1 %v4316_v57 }
 0x81e   : > { %2890 = vmatprep.subr.bf16.mxu0 %v4321_v58  ;;  %2931 = vmatprep.subr.bf16.mxu1 %v4324_v20 }
 0x821   : > { %2891 = vmatpush1.bf16.msra.mxu0 %v4319_v21  ;;  %2932 = vmatpush1.bf16.msra.mxu1 %v4322_v59 }
 0x822   : > { %3770 = vmatprep.subr.bf16.mxu0 %v4325_v60  ;;  %3792 = vmatprep.subr.bf16.mxu1 %v4326_v61 }
 0x824   : > { %2909 = vmatmul.mubr.bf16.vlgmr.msra.gmra.mrb[68].mxu0 %v5397_v0  ;;  %2950 = vmatmul.mubr.bf16.vlgmr.msra.gmra.mrb[68].mxu1 %v5397_v0 }
 0x825   : > { %3771 = vmatpush3.bf16.msra.mxu0 %v4327_v62  ;;  %3793 = vmatpush3.bf16.msra.mxu1 %v4328_v1 }
 0x826   : > { %3772 = vmatprep.subr.bf16.mxu0 %v4329_v2  ;;  %3794 = vmatprep.subr.bf16.mxu1 %v4330_v39 }
 0x829   : > { %3773 = vmatpush3.bf16.msra.mxu0 %v4331_v36  ;;  %3795 = vmatpush3.bf16.msra.mxu1 %v4332_v3 }
 0x82a   : > { %3774 = vmatprep.subr.bf16.mxu0 %v4333_v40  ;;  %3796 = vmatprep.subr.bf16.mxu1 %v4334_v5 }
 0x82d   : > { %3775 = vmatpush3.bf16.msra.mxu0 %v4335_v6  ;;  %3797 = vmatpush3.bf16.msra.mxu1 %v4336_v7 }
 0x82e   : > { %3776 = vmatprep.subr.bf16.mxu0 %v4337_v8  ;;  %3798 = vmatprep.subr.bf16.mxu1 %v4338_v9 }
 0x831   : > { %3777 = vmatpush3.bf16.msra.mxu0 %v4339_v12  ;;  %3799 = vmatpush3.bf16.msra.mxu1 %v4340_v13 }
 0x832   : > { %3778 = vmatprep.subr.bf16.mxu0 %v4341_v14  ;;  %3800 = vmatprep.subr.bf16.mxu1 %v4342_v15 }
 0x835   : > { %3779 = vmatpush3.bf16.msra.mxu0 %v4343_v16  ;;  %3801 = vmatpush3.bf16.msra.mxu1 %v4344_v17 }
 0x836   : > { %3780 = vmatprep.subr.bf16.mxu0 %v4345_v53  ;;  %3802 = vmatprep.subr.bf16.mxu1 %v4346_v18 }
 0x839   : > { %3781 = vmatpush3.bf16.msra.mxu0 %v4347_v54  ;;  %3803 = vmatpush3.bf16.msra.mxu1 %v4348_v19 }
 0x83a   : > { %3782 = vmatprep.subr.bf16.mxu0 %v4349_v22  ;;  %3804 = vmatprep.subr.bf16.mxu1 %v4350_v23 }
 0x83d   : > { %3783 = vmatpush3.bf16.msra.mxu0 %v4351_v24  ;;  %3805 = vmatpush3.bf16.msra.mxu1 %v4352_v25 }
 0x83e   : > { %3784 = vmatprep.subr.bf16.mxu0 %v4353_v26  ;;  %3806 = vmatprep.subr.bf16.mxu1 %v4354_v27 }
 0x841   : > { %3785 = vmatpush3.bf16.msra.mxu0 %v4355_v28  ;;  %3807 = vmatpush3.bf16.msra.mxu1 %v4356_v29 }
 0x8d7   : > { %v2636_v30 = vpop.f32.mrb[64].mxu0  ;;  %v2677_v63 = vpop.f32.mrb[64].mxu1 }
 0x8d8   : > { %v3642_v0 = vmul.f32 -1.442695, %v2636_v30  ;;  %v3644_v4 = vmul.f32 -1.442695, %v2677_v63  ;;  %v2638_v31 = vpop.f32.mrb[65].mxu0  ;;  %v2679_v32 = vpop.f32.mrb[65].mxu1 }
 0x8d9   : > { %v3643_v33 = vmul.f32 -1.442695, %v2638_v31  ;;  %v3645_v34 = vmul.f32 -1.442695, %v2679_v32  ;;  %v2640_v35 = vpop.f32.mrb[66].mxu0  ;;  %v2681_v38 = vpop.f32.mrb[66].mxu1 }
 0x8da   : > { %4377 = vpow2.f32 %v3642_v0  ;;  %v2641_v41 = vpop.f32.mrb[67].mxu0  ;;  %v2682_v44 = vpop.f32.mrb[67].mxu1 }
 0x8db   : > { %4379 = vpow2.f32 %v3644_v4 }
 0x8dc   : > { %4381 = vpow2.f32 %v3643_v33 }
 0x8dd   : > { %4383 = vpow2.f32 %v3645_v34 }
 0x8e4   : > { %v4378_v45 = vpop.eup %4377 }
 0x8e5   : > { %v4380_v46 = vpop.eup %4379  ;;  %v2970_v47 = vadd.f32 1.0, %v4378_v45 }
 0x8e6   : > { %v4382_v48 = vpop.eup %4381  ;;  %v2972_v49 = vadd.f32 1.0, %v4380_v46 }
 0x8e7   : > { %v4384_v50 = vpop.eup %4383  ;;  %4385 = vrcp.f32 %v2970_v47  ;;  %v2971_v51 = vadd.f32 1.0, %v4382_v48 }
 0x8e8   : > { %4387 = vrcp.f32 %v2972_v49  ;;  %v2973_v52 = vadd.f32 1.0, %v4384_v50 }
 0x8e9   : > { %4389 = vrcp.f32 %v2971_v51 }
 0x8ea   : > { %4391 = vrcp.f32 %v2973_v52 }
 0x8f1   : > { %v4386_v55 = vpop.eup %4385 }
 0x8f2   : > { %v4388_v56 = vpop.eup %4387  ;;  %v2982_v42 = vmul.f32 %v4386_v55, %v2636_v30 }
 0x8f3   : > { %v4390_v10 = vpop.eup %4389  ;;  %v2984_v43 = vmul.f32 %v4388_v56, %v2677_v63 }
 0x8f4   : > { %v4392_v11 = vpop.eup %4391  ;;  %v2983_v57 = vmul.f32 %v4390_v10, %v2638_v31 }
 0x8f5   : > { %v2985_v58 = vmul.f32 %v4392_v11, %v2679_v32 }
 0x8f7   : > { %v2910_v20 = vpop.f32.mrb[68].mxu0  ;;  %v2951_v21 = vpop.f32.mrb[68].mxu1 }
 0x8f8   : > { %v2986_v59 = vmul.f32 %v2982_v42, %v2910_v20  ;;  %v2988_v60 = vmul.f32 %v2984_v43, %v2951_v21  ;;  %v2912_v61 = vpop.f32.mrb[69].mxu0  ;;  %v2953_v62 = vpop.f32.mrb[69].mxu1 }
 0x8f9   : > { %v2987_v1 = vmul.f32 %v2983_v57, %v2912_v61  ;;  %v2989_v2 = vmul.f32 %v2985_v58, %v2953_v62  ;;  %v2914_v39 = vpop.f32.mrb[70].mxu0  ;;  %v2955_v36 = vpop.f32.mrb[70].mxu1 }
 0x8fa   : > { %v2915_v3 = vpop.f32.mrb[71].mxu0  ;;  %v2956_v40 = vpop.f32.mrb[71].mxu1  ;;  %v2990_v7 = vpack.c.bf16 %v2986_v59, %v2986_v59  ;;  %v2992_v8 = vpack.c.bf16 %v2988_v60, %v2988_v60 }
 0x8fb   : > { %v2991_v5 = vpack.c.bf16 %v2987_v1, %v2987_v1  ;;  %v2993_v6 = vpack.c.bf16 %v2989_v2, %v2989_v2 }
 0x8fd   : > { %3282 = vmatprep.mubr.bf16.mxu0 %v2991_v5  ;;  %3322 = vmatprep.mubr.bf16.mxu1 %v2993_v6 }
 0x8fe   : > { %3283 = vmatmul.mubr.bf16.vlgmr.msra.gmra.mrb[72].mxu0 %v2990_v7  ;;  %3323 = vmatmul.mubr.bf16.vlgmr.msra.gmra.mrb[72].mxu1 %v2992_v8 }
 0x9d1   : > { %v3786_v9 = vpop.f32.mrb[72].mxu0  ;;  %v3808_v12 = vpop.f32.mrb[72].mxu1 }
 0x9d2   : > { %v3787_v13 = vpop.f32.mrb[73].mxu0  ;;  %v3809_v14 = vpop.f32.mrb[73].mxu1 }
 0x9d3   : > { %v3788_v15 = vadd.f32 %v3787_v13, %v3786_v9  ;;  %v3810_v16 = vadd.f32 %v3809_v14, %v3808_v12  ;;  %v3789_v17 = vpop.f32.mrb[74].mxu0  ;;  %v3811_v53 = vpop.f32.mrb[74].mxu1 }
 0x9d4   : > { %v3790_v18 = vpop.f32.mrb[75].mxu0  ;;  %v3812_v54 = vpop.f32.mrb[75].mxu1 }
 0x9d5   : > { %v3325_v19 = vadd.f32 %v3810_v16, %v3788_v15 }
 0x9d7   : > { %v3330_v22 = vadd.f32 %v3325_v19, %v5389_v37 }
 0x9d9   : > { %3331 = vst [vmem:[%s571_s15] sm:$0xff] %v3330_v22 }
 0x9da   : > { %4661 = shalt.err (!%p4658_p10)
}
 0x9db   : > { %s4662_s22 = scalar_lea.hbm %s5410_s18, 128  ;;  %s4666_s3 = scalar_lea.hbm %s5509_s19, 256 }
 0x9dc   : > { %p4663_p11 = scmp.ne.s32.totalorder %s5410_s18, %s4662_s22  ;;  %p4667_p7 = scmp.lt.u32.totalorder %s5410_s18, %s5509_s19 }
 0x9dd   : > { %p4668_p6 = scmp.lt.u32.totalorder %s4666_s3, %s4662_s22  ;;  %p4670_p12 = scmp.lt.u32.totalorder %s4662_s22, %s5410_s18 }
 0x9de   : > { %p4664_p8 = pnand %p4663_p11, %p5510_p13 }
 0x9df   : > { %p4669_p9 = por %p4668_p6, %p4667_p7 }
 0x9e0   : > { %p4665_p5 = pneg %p4664_p8 }
 0x9e1   : > { %p4671_p1 = por %p4670_p12, %p4669_p9 }
 0x9e3   : > { %p4672_p3 = pnand %p4671_p1, %p4665_p5 }
 0x9e5   : > { %4675 = shalt.err (!%p4672_p3)
}
 0x9e6   : > { %4088 = dma.vmem_to_hbm [thread:$0]  (%p5510_p13), %s5412_s30, 128, %s5410_s18, %s3333_s9  }
 0x9e7 PF: > { %s3358_s11 = sand.u32 1, %s4718_s25   ;;  %p5511_p2 = scmp.ne.s32.totalorder %s5494_s20, 0 }
 0x9e8   : > { %p5512_p0 = scmp.ge.s32.totalorder %s4730_s28, 2  ;;  %s3359_s24 = scalar_lea.sflag [#allocation4], %s3358_s11 }
 0x9ea   : > { %p4120_p4 = pnand %p5512_p0, %p5511_p2 }
 0x9ec   : > { %4713 = dma.done.wait (!%p4120_p4), %s3359_s24, 128  }
 0x9ed   : > { %4715 = vsyncadd (!%p4120_p4), %s3359_s24, 4294967168  ;;  %p30_p10 = scmp.ge.s32.totalorder %s5050_s16, 4   ;;  %s5513_s25 = smov %s4722_s26 }
 0x9ee   : > { %s5514_s26 = smov %s4726_s27  ;;  %s5515_s27 = smov %s5061_s29 }
 0x9ef   : > { %s5516_s28 = smov %s5050_s16  ;;  %32 = sbr.rel (!%p30_p10) target bundleno = 17 (0x11), region = 149 }
 0x9f6   :  { %3364 = vsyncpa [#allocation3], 1 }
 0x9f7   :  { %3366 = vsyncpa [#allocation3 + $0x1], 1 }
 0x9f8   :  { %3367 = vsyncpa [#allocation6], 1 }
 0x9f9   :  { %3368 = vsyncpa [#allocation9], 1 }
 0x9fa   :  { %3369 = vsyncpa [#allocation12], 1 }
 0x9fb   :  { %3370 = vsyncpa [#allocation15], 1 }
 0x9fc   :  { %3371 = vsyncpa [#allocation4], 1 }
 0x9fd   :  { %3373 = vsyncpa [#allocation4 + $0x1], 1 }

</bundles_post_ra>
